<compile_context>
chip_gen: v7x
topology: tpu7x:2x2x1
jax: 0.10.0
libtpu: 0.0.40
codegen_flags: <defaults>
</compile_context>

<pallas_src>
import math
import numpy as np
import jax
import jax.numpy as jnp
from jax.experimental import pallas as pl
from jax.experimental.pallas import tpu as pltpu

# --- model hyperparameters (small, consistent with the module) ---
EMBED = 32
HEADS = 4
HEAD_DIM = EMBED // HEADS
NUM_LAYERS = 2
FWD_EXP = 4
FFN = FWD_EXP * EMBED            # 128
SEQ = 8
BATCH = 2
INPUT_SIZE = 16
EPS = 1e-5

BS = BATCH * SEQ                 # 16  query rows (batch folded into rows)
BHS = BATCH * HEADS * SEQ        # 64  (batch, head, key) rows / columns
LANES = 128

# ---- constant-slab layout: one (TOTAL_ROWS, 128) f32 array, one DMA ----
# Every block starts at lane 0 and at a row offset that is a multiple of 8,
# so all in-kernel accesses are clean row-range / lane-0 slices.
POS_R = 0                        # (BS, EMBED)    positional enc tiled over batch
WPROJ_R = 16                     # (IN, EMBED)    input projection (pre-transposed)
BSEL_R = 32                      # (BS, BHS)      own-batch column selector
REPL_R = 48                      # (BHS, BS)      batch/head row replication matrix
HMASK_R = 112                    # (BHS, EMBED)   head feature selector
SEG_R = 176                      # (BHS, BHS)     per-(batch,head) block-diag ones
HDR_ROWS = 240
VKQ_OFF = 0                      # (EMBED, 3E)    [blockdiag(Wv.T)|Wk.T|Wq.T]
FC_OFF = 32                      # (EMBED, EMBED) fc_out.T
W1_OFF = 64                      # (EMBED, FFN)   ffn1.T
W2_OFF = 96                      # (FFN, EMBED)   ffn2.T
VEC_OFF = 224                    # (8, FFN)       [bfc,g1,be1,b1,b2,g2,be2,0]
LAYER_ROWS = 232
TOTAL_ROWS = HDR_ROWS + NUM_LAYERS * LAYER_ROWS   # 704 rows ~= 352 KiB


# ----------------------------- Pallas kernel -----------------------------

def _layernorm(v, gamma, beta):
    mu = jnp.mean(v, axis=-1, keepdims=True)
    var = jnp.mean((v - mu) ** 2, axis=-1, keepdims=True)
    return (v - mu) * jax.lax.rsqrt(var + EPS) * gamma + beta


def _encoder_kernel(const_ref, x_ref, cmask_ref, o_ref):
    """Whole encoder forward, grid-less, batch folded into rows.

    const_ref (TOTAL_ROWS, 128)  all weights + structural constants (one DMA)
    x_ref     (BS, IN)           flattened input
    cmask_ref (BS, BHS)          combined batch + user attention mask
    o_ref     (BS, EMBED)
    """
    scale = jnp.float32(1.0 / math.sqrt(EMBED))

    # ---- constants, hoisted out of the layer loop (loaded once) ----
    pos = const_ref[POS_R:POS_R + BS, 0:EMBED]
    wprojT = const_ref[WPROJ_R:WPROJ_R + INPUT_SIZE, 0:EMBED]
    bsel = const_ref[BSEL_R:BSEL_R + BS, 0:BHS]
    repl = const_ref[REPL_R:REPL_R + BHS, 0:BS]
    hmask = const_ref[HMASK_R:HMASK_R + BHS, 0:EMBED]
    seg = const_ref[SEG_R:SEG_R + BHS, 0:BHS]
    masked = cmask_ref[...] == 0            # hoisted: one compare for all layers
    not_own = 1.0 - bsel                    # keeps cross-batch denominators != 0

    # input projection (no bias) + positional encoding; dropout == identity.
    x = jnp.dot(x_ref[...], wprojT, preferred_element_type=jnp.float32) + pos

    for l in range(NUM_LAYERS):             # static unroll (L = 2)
        base = HDR_ROWS + l * LAYER_ROWS
        wvkq = const_ref[base + VKQ_OFF:base + VKQ_OFF + EMBED, 0:3 * EMBED]
        wfcT = const_ref[base + FC_OFF:base + FC_OFF + EMBED, 0:EMBED]
        w1T = const_ref[base + W1_OFF:base + W1_OFF + EMBED, 0:FFN]
        w2T = const_ref[base + W2_OFF:base + W2_OFF + FFN, 0:EMBED]
        vec = const_ref[base + VEC_OFF:base + VEC_OFF + 8, 0:FFN]
        bfc, g1, be1 = vec[0:1, 0:EMBED], vec[1:2, 0:EMBED], vec[2:3, 0:EMBED]
        b1 = vec[3:4, :]
        b2, g2, be2 = vec[4:5, 0:EMBED], vec[5:6, 0:EMBED], vec[6:7, 0:EMBED]

        # fused V/K/Q projection: one (BS,E)x(E,3E) MXU push per layer.
        qkv = jnp.dot(x, wvkq, preferred_element_type=jnp.float32)      # (BS,3E)
        q = qkv[:, 2 * EMBED:3 * EMBED]
        # replicate K,V rows to (batch, head, key) layout with one MXU push,
        # then head-select with a VPU mask (no batch loop, no concatenates).
        kv_rep = jnp.dot(repl, qkv[:, 0:2 * EMBED],
                         preferred_element_type=jnp.float32)            # (BHS,2E)
        v_sel = kv_rep[:, 0:EMBED] * hmask
        k_sel = kv_rep[:, EMBED:2 * EMBED] * hmask

        # energy for all batches / heads at once: (BS, BHS)
        e = jnp.einsum("qd,kd->qk", q, k_sel,
                       preferred_element_type=jnp.float32)
        # masked_fill BEFORE the 1/sqrt(E) scale, as in the module.
        e = jnp.where(masked, jnp.float32(-1e20), e) * scale
        # softmax per (batch, head) block: a row-wide max is constant within
        # each block so it cancels exactly; bsel zeroes cross-batch columns
        # even in the fully-masked-row (uniform) edge case.
        p = jnp.exp(e - jnp.max(e, axis=-1, keepdims=True)) * bsel
        denom = jnp.dot(p, seg, preferred_element_type=jnp.float32) + not_own
        attn = p * pl.reciprocal(denom, approx=True)     # EUP slot, ~free
        att = jnp.dot(attn, v_sel, preferred_element_type=jnp.float32)  # (BS,E)
        att = jnp.dot(att, wfcT, preferred_element_type=jnp.float32) + bfc

        # post-norm residuals; dropout == identity (eval mode).
        h1 = _layernorm(att + x, g1, be1)
        ff = jnp.maximum(
            jnp.dot(h1, w1T, preferred_element_type=jnp.float32) + b1, 0.0)
        ff = jnp.dot(ff, w2T, preferred_element_type=jnp.float32) + b2
        x = _layernorm(ff + h1, g2, be2)

    # TODO(synk): a lane-padded (BS, 128) output store would turn this into an
    # unmasked vst, but the wrapper-side [:, :EMBED] slice it requires is an
    # extra XLA op per call that outweighs the ~2 KB of masked stores saved.
    o_ref[...] = x


# ----------------------------- host-side packing (runs ONCE) -----------------------------

def positional_encoding(seq_len, embed):
    position = np.arange(seq_len, dtype=np.float32)[:, None]
    div_term = np.exp(np.arange(0, embed, 2, dtype=np.float32)
                      * (-math.log(10000.0) / embed))
    pe = np.zeros((seq_len, embed), np.float32)
    pe[:, 0::2] = np.sin(position * div_term)
    pe[:, 1::2] = np.cos(position * div_term)
    return pe


def prepare_encoder(params):
    """Host-side packing, executed ONCE outside the per-call jit: all weights
    and structural constants go into a single lane-dense (TOTAL_ROWS, 128)
    slab so the kernel prologue is one dense DMA instead of 11 narrow ones."""
    slab = np.zeros((TOTAL_ROWS, LANES), np.float32)

    def put(r, c, a):
        a = np.asarray(a, np.float32)
        slab[r:r + a.shape[0], c:c + a.shape[1]] = a

    put(POS_R, 0, np.tile(positional_encoding(SEQ, EMBED), (BATCH, 1)))
    put(WPROJ_R, 0, np.asarray(params["wproj"]).T)
    put(BSEL_R, 0, np.kron(np.eye(BATCH), np.ones((SEQ, HEADS * SEQ))))
    put(REPL_R, 0, np.kron(np.eye(BATCH), np.tile(np.eye(SEQ), (HEADS, 1))))
    put(HMASK_R, 0, np.tile(np.kron(np.eye(HEADS), np.ones((SEQ, HEAD_DIM))),
                            (BATCH, 1)))
    put(SEG_R, 0, np.kron(np.eye(BATCH * HEADS), np.ones((SEQ, SEQ))))

    eye_h = np.eye(HEADS, dtype=np.float32)
    for l, L in enumerate(params["layers"]):
        base = HDR_ROWS + l * LAYER_ROWS
        blk = lambda w: np.kron(eye_h, np.asarray(w).T)   # per-head Linear -> (E,E)
        put(base + VKQ_OFF, 0,
            np.concatenate([blk(L["wv"]), blk(L["wk"]), blk(L["wq"])], axis=1))
        put(base + FC_OFF, 0, np.asarray(L["wfc"]).T)
        put(base + W1_OFF, 0, np.asarray(L["w1"]).T)
        put(base + W2_OFF, 0, np.asarray(L["w2"]).T)
        vec = np.zeros((8, FFN), np.float32)
        for r, name in enumerate(["bfc", "g1", "be1", "b1", "b2", "g2", "be2"]):
            v = np.asarray(L[name])
            vec[r, :v.shape[0]] = v
        put(base + VEC_OFF, 0, vec)
    return jnp.asarray(slab)


# ----------------------------- per-call wrapper -----------------------------

@jax.jit
def encoder_forward(x, mask, const_slab):
    """Per-call work: one tiny mask expansion + one fused pallas_call."""
    B, S, IN = x.shape
    # combined batch + user mask, columns indexed (batch', head, key):
    #   cmask[(b,q), (b',h,j)] = (b == b') * mask[q, j]
    cmask = jnp.kron(jnp.eye(B, dtype=jnp.float32), jnp.tile(mask, (1, HEADS)))
    vmem = pl.BlockSpec(memory_space=pltpu.MemorySpace.VMEM)
    out = pl.pallas_call(
        _encoder_kernel,
        out_shape=jax.ShapeDtypeStruct((B * S, EMBED), jnp.float32),
        in_specs=[vmem, vmem, vmem],
        out_specs=vmem,
    )(const_slab, x.reshape(B * S, IN), cmask)
    # TODO(synk): for larger batch / many stacked clips, add a grid over batch
    # with dimension_semantics=("parallel",) to use both v7x TensorCores; at
    # B=2 the split overhead exceeds the work, so keep the grid-less call.
    return out.reshape(B, S, EMBED)


# ----------------------------- parameter / input setup -----------------------------

def init_params(key):
    keys = jax.random.split(key, 1 + NUM_LAYERS)
    params = {"wproj": 0.1 * jax.random.normal(keys[0], (EMBED, INPUT_SIZE), jnp.float32),
              "layers": []}
    for l in range(NUM_LAYERS):
        k = jax.random.split(keys[1 + l], 12)
        params["layers"].append(dict(
            wv=0.2 * jax.random.normal(k[0], (HEAD_DIM, HEAD_DIM), jnp.float32),
            wk=0.2 * jax.random.normal(k[1], (HEAD_DIM, HEAD_DIM), jnp.float32),
            wq=0.2 * jax.random.normal(k[2], (HEAD_DIM, HEAD_DIM), jnp.float32),
            wfc=0.1 * jax.random.normal(k[3], (EMBED, EMBED), jnp.float32),
            bfc=0.05 * jax.random.normal(k[4], (EMBED,), jnp.float32),
            g1=jnp.ones((EMBED,), jnp.float32),
            be1=0.05 * jax.random.normal(k[5], (EMBED,), jnp.float32),
            w1=0.1 * jax.random.normal(k[6], (FFN, EMBED), jnp.float32),
            b1=0.05 * jax.random.normal(k[7], (FFN,), jnp.float32),
            w2=0.1 * jax.random.normal(k[8], (EMBED, FFN), jnp.float32),
            b2=0.05 * jax.random.normal(k[9], (EMBED,), jnp.float32),
            g2=jnp.ones((EMBED,), jnp.float32),
            be2=0.05 * jax.random.normal(k[10], (EMBED,), jnp.float32),
        ))
    return params


# ----------------------------- plain-JAX reference -----------------------------

def _ref_layernorm(v, g, b):
    mu = jnp.mean(v, axis=-1, keepdims=True)
    var = jnp.mean((v - mu) ** 2, axis=-1, keepdims=True)
    return (v - mu) / jnp.sqrt(var + EPS) * g + b


def _ref_block(x, mask, L):
    B, S, E = x.shape
    xh = x.reshape(B, S, HEADS, HEAD_DIM)
    v = jnp.einsum("bshd,od->bsho", xh, L["wv"])
    k = jnp.einsum("bshd,od->bsho", xh, L["wk"])
    q = jnp.einsum("bshd,od->bsho", xh, L["wq"])
    energy = jnp.einsum("bqhd,bkhd->bhqk", q, k)
    energy = jnp.where(mask[None, None] == 0, -1e20, energy)
    attn = jax.nn.softmax(energy / jnp.sqrt(jnp.float32(EMBED)), axis=-1)
    out = jnp.einsum("bhql,blhd->bqhd", attn, v).reshape(B, S, E)
    out = out @ L["wfc"].T + L["bfc"]
    h1 = _ref_layernorm(out + x, L["g1"], L["be1"])
    ff = jax.nn.relu(h1 @ L["w1"].T + L["b1"])
    ff = ff @ L["w2"].T + L["b2"]
    return _ref_layernorm(ff + h1, L["g2"], L["be2"])


def encoder_ref(x, mask, params):
    pos = jnp.asarray(positional_encoding(x.shape[1], EMBED))
    out = jnp.einsum("bsi,ei->bse", x, params["wproj"]) + pos[None]
    for L in params["layers"]:
        out = _ref_block(out, mask, L)
    return out


# ----------------------------- main -----------------------------

if __name__ == "__main__":
    key = jax.random.PRNGKey(0)
    kx, kp = jax.random.split(key)
    x = jax.random.normal(kx, (BATCH, SEQ, INPUT_SIZE), jnp.float32)
    # mask of ones == no masking (mirrors passing a fully-valid mask)
    mask = jnp.ones((SEQ, SEQ), jnp.float32)
    params = init_params(kp)

    const_slab = prepare_encoder(params)          # host-side packing, ONCE

    out = jax.block_until_ready(encoder_forward(x, mask, const_slab))
    ref = jax.block_until_ready(encoder_ref(x, mask, params))

    assert out.shape == (BATCH, SEQ, EMBED)
    # Tolerance 3e-2: both sides use default-precision (single-pass bf16) MXU
    # matmuls with different contraction groupings, and the kernel now also
    # uses the approximate EUP reciprocal and a 0/1 replication matmul for K/V
    # (each contributes ~1e-3-level error on O(1) activations).  An f32-exact
    # 1e-5 check would require HIGHEST-precision matmuls on both sides.
    max_err = float(jnp.max(jnp.abs(out - ref)))
    assert max_err < 3e-2, f"mismatch vs reference, max abs err = {max_err}"

    print("KERNEL_OK")
</pallas_src>

<mosaic_0001>
module attributes {stable_mosaic.version = 11 : i64} {
  func.func @_encoder_kernel(%arg0: memref<704x128xf32, #tpu.memory_space<vmem>>, %arg1: memref<16x16xf32, #tpu.memory_space<vmem>>, %arg2: memref<16x64xf32, #tpu.memory_space<vmem>>, %arg3: memref<16x32xf32, #tpu.memory_space<vmem>>) attributes {dimension_semantics = [], scalar_prefetch = 0 : i64, scratch_operands = 0 : i64, tpu.core_type = #tpu.core_type<tc>} {
    %c0 = arith.constant 0 : index
    %c0_0 = arith.constant 0 : index
    %0 = vector.load %arg0[%c0, %c0_0] : memref<704x128xf32, #tpu.memory_space<vmem>>, vector<16x32xf32>
    %c16 = arith.constant 16 : index
    %c0_1 = arith.constant 0 : index
    %1 = vector.load %arg0[%c16, %c0_1] : memref<704x128xf32, #tpu.memory_space<vmem>>, vector<16x32xf32>
    %c32 = arith.constant 32 : index
    %c0_2 = arith.constant 0 : index
    %2 = vector.load %arg0[%c32, %c0_2] : memref<704x128xf32, #tpu.memory_space<vmem>>, vector<16x64xf32>
    %c48 = arith.constant 48 : index
    %c0_3 = arith.constant 0 : index
    %3 = vector.load %arg0[%c48, %c0_3] : memref<704x128xf32, #tpu.memory_space<vmem>>, vector<64x16xf32>
    %c112 = arith.constant 112 : index
    %c0_4 = arith.constant 0 : index
    %4 = vector.load %arg0[%c112, %c0_4] : memref<704x128xf32, #tpu.memory_space<vmem>>, vector<64x32xf32>
    %c176 = arith.constant 176 : index
    %c0_5 = arith.constant 0 : index
    %5 = vector.load %arg0[%c176, %c0_5] : memref<704x128xf32, #tpu.memory_space<vmem>>, vector<64x64xf32>
    %c0_6 = arith.constant 0 : index
    %c0_7 = arith.constant 0 : index
    %6 = vector.load %arg2[%c0_6, %c0_7] : memref<16x64xf32, #tpu.memory_space<vmem>>, vector<16x64xf32>
    %cst = arith.constant 0.000000e+00 : f32
    %7 = vector.broadcast %cst : f32 to vector<16x64xf32>
    %8 = arith.cmpf oeq, %6, %7 : vector<16x64xf32>
    %cst_8 = arith.constant 1.000000e+00 : f32
    %9 = vector.broadcast %cst_8 : f32 to vector<16x64xf32>
    %10 = arith.subf %9, %2 : vector<16x64xf32>
    %c0_9 = arith.constant 0 : index
    %c0_10 = arith.constant 0 : index
    %11 = vector.load %arg1[%c0_9, %c0_10] : memref<16x16xf32, #tpu.memory_space<vmem>>, vector<16x16xf32>
    %cst_11 = arith.constant dense<0.000000e+00> : vector<16x32xf32>
    %12 = tpu.matmul %11, %1, %cst_11 {dimension_numbers = #tpu.dot_dimension_numbers<[1], [0], [0], [1], [0, 0, 1, 1], [], []>} : vector<16x16xf32>, vector<16x32xf32>, vector<16x32xf32> -> vector<16x32xf32>
    %13 = arith.addf %12, %0 : vector<16x32xf32>
    %c240 = arith.constant 240 : index
    %c0_12 = arith.constant 0 : index
    %14 = vector.load %arg0[%c240, %c0_12] : memref<704x128xf32, #tpu.memory_space<vmem>>, vector<32x96xf32>
    %c272 = arith.constant 272 : index
    %c0_13 = arith.constant 0 : index
    %15 = vector.load %arg0[%c272, %c0_13] : memref<704x128xf32, #tpu.memory_space<vmem>>, vector<32x32xf32>
    %c304 = arith.constant 304 : index
    %c0_14 = arith.constant 0 : index
    %16 = vector.load %arg0[%c304, %c0_14] : memref<704x128xf32, #tpu.memory_space<vmem>>, vector<32x128xf32>
    %c336 = arith.constant 336 : index
    %c0_15 = arith.constant 0 : index
    %17 = vector.load %arg0[%c336, %c0_15] : memref<704x128xf32, #tpu.memory_space<vmem>>, vector<128x32xf32>
    %c464 = arith.constant 464 : index
    %c0_16 = arith.constant 0 : index
    %18 = vector.load %arg0[%c464, %c0_16] : memref<704x128xf32, #tpu.memory_space<vmem>>, vector<8x128xf32>
    %19 = vector.extract_strided_slice %18 {offsets = [0, 0], sizes = [1, 32], strides = [1, 1]} : vector<8x128xf32> to vector<1x32xf32>
    %20 = vector.extract_strided_slice %18 {offsets = [1, 0], sizes = [1, 32], strides = [1, 1]} : vector<8x128xf32> to vector<1x32xf32>
    %21 = vector.extract_strided_slice %18 {offsets = [2, 0], sizes = [1, 32], strides = [1, 1]} : vector<8x128xf32> to vector<1x32xf32>
    %22 = vector.extract_strided_slice %18 {offsets = [3, 0], sizes = [1, 128], strides = [1, 1]} : vector<8x128xf32> to vector<1x128xf32>
    %23 = vector.extract_strided_slice %18 {offsets = [4, 0], sizes = [1, 32], strides = [1, 1]} : vector<8x128xf32> to vector<1x32xf32>
    %24 = vector.extract_strided_slice %18 {offsets = [5, 0], sizes = [1, 32], strides = [1, 1]} : vector<8x128xf32> to vector<1x32xf32>
    %25 = vector.extract_strided_slice %18 {offsets = [6, 0], sizes = [1, 32], strides = [1, 1]} : vector<8x128xf32> to vector<1x32xf32>
    %cst_17 = arith.constant dense<0.000000e+00> : vector<16x96xf32>
    %26 = tpu.matmul %13, %14, %cst_17 {dimension_numbers = #tpu.dot_dimension_numbers<[1], [0], [0], [1], [0, 0, 1, 1], [], []>} : vector<16x32xf32>, vector<32x96xf32>, vector<16x96xf32> -> vector<16x96xf32>
    %27 = vector.extract_strided_slice %26 {offsets = [0, 64], sizes = [16, 32], strides = [1, 1]} : vector<16x96xf32> to vector<16x32xf32>
    %28 = vector.extract_strided_slice %26 {offsets = [0, 0], sizes = [16, 64], strides = [1, 1]} : vector<16x96xf32> to vector<16x64xf32>
    %cst_18 = arith.constant dense<0.000000e+00> : vector<64x64xf32>
    %29 = tpu.matmul %3, %28, %cst_18 {dimension_numbers = #tpu.dot_dimension_numbers<[1], [0], [0], [1], [0, 0, 1, 1], [], []>} : vector<64x16xf32>, vector<16x64xf32>, vector<64x64xf32> -> vector<64x64xf32>
    %30 = vector.extract_strided_slice %29 {offsets = [0, 0], sizes = [64, 32], strides = [1, 1]} : vector<64x64xf32> to vector<64x32xf32>
    %31 = arith.mulf %30, %4 : vector<64x32xf32>
    %32 = vector.extract_strided_slice %29 {offsets = [0, 32], sizes = [64, 32], strides = [1, 1]} : vector<64x64xf32> to vector<64x32xf32>
    %33 = arith.mulf %32, %4 : vector<64x32xf32>
    "tpu.trace_start"() <{level = 10 : i32, message = "qd,kd->qk"}> : () -> ()
    %cst_19 = arith.constant dense<0.000000e+00> : vector<16x64xf32>
    %34 = tpu.matmul %27, %33, %cst_19 {dimension_numbers = #tpu.dot_dimension_numbers<[1], [1], [0], [0], [0, 0, 1, 0], [], []>} : vector<16x32xf32>, vector<64x32xf32>, vector<16x64xf32> -> vector<16x64xf32>
    %cst_20 = arith.constant -1.000000e+20 : f32
    "tpu.trace_stop"() : () -> ()
    %35 = vector.broadcast %cst_20 : f32 to vector<16x64xf32>
    %36 = arith.select %8, %35, %34 : vector<16x64xi1>, vector<16x64xf32>
    %cst_21 = arith.constant 0.176776692 : f32
    %37 = vector.broadcast %cst_21 : f32 to vector<16x64xf32>
    %38 = arith.mulf %36, %37 : vector<16x64xf32>
    %cst_22 = arith.constant dense<0xFF800000> : vector<16xf32>
    %39 = vector.multi_reduction <maximumf>, %38, %cst_22 [1] : vector<16x64xf32> to vector<16xf32>
    %40 = vector.shape_cast %39 : vector<16xf32> to vector<16x1xf32>
    %41 = vector.broadcast %40 : vector<16x1xf32> to vector<16x64xf32>
    %42 = arith.subf %38, %41 : vector<16x64xf32>
    %43 = math.exp %42 : vector<16x64xf32>
    %44 = arith.mulf %43, %2 : vector<16x64xf32>
    %cst_23 = arith.constant dense<0.000000e+00> : vector<16x64xf32>
    %45 = tpu.matmul %44, %5, %cst_23 {dimension_numbers = #tpu.dot_dimension_numbers<[1], [0], [0], [1], [0, 0, 1, 1], [], []>} : vector<16x64xf32>, vector<64x64xf32>, vector<16x64xf32> -> vector<16x64xf32>
    %46 = arith.addf %45, %10 : vector<16x64xf32>
    %47 = tpu.reciprocal %46 {approx = true} : vector<16x64xf32> -> vector<16x64xf32>
    %48 = arith.mulf %44, %47 : vector<16x64xf32>
    %cst_24 = arith.constant dense<0.000000e+00> : vector<16x32xf32>
    %49 = tpu.matmul %48, %31, %cst_24 {dimension_numbers = #tpu.dot_dimension_numbers<[1], [0], [0], [1], [0, 0, 1, 1], [], []>} : vector<16x64xf32>, vector<64x32xf32>, vector<16x32xf32> -> vector<16x32xf32>
    %cst_25 = arith.constant dense<0.000000e+00> : vector<16x32xf32>
    %50 = tpu.matmul %49, %15, %cst_25 {dimension_numbers = #tpu.dot_dimension_numbers<[1], [0], [0], [1], [0, 0, 1, 1], [], []>} : vector<16x32xf32>, vector<32x32xf32>, vector<16x32xf32> -> vector<16x32xf32>
    %51 = vector.broadcast %19 : vector<1x32xf32> to vector<16x32xf32>
    %52 = arith.addf %50, %51 : vector<16x32xf32>
    %53 = arith.addf %52, %13 : vector<16x32xf32>
    %cst_26 = arith.constant dense<0.000000e+00> : vector<16xf32>
    %54 = vector.multi_reduction <add>, %53, %cst_26 [1] : vector<16x32xf32> to vector<16xf32>
    %55 = vector.shape_cast %54 : vector<16xf32> to vector<16x1xf32>
    %cst_27 = arith.constant 3.200000e+01 : f32
    %56 = vector.broadcast %cst_27 : f32 to vector<16x1xf32>
    %57 = arith.divf %55, %56 : vector<16x1xf32>
    %58 = vector.broadcast %57 : vector<16x1xf32> to vector<16x32xf32>
    %59 = arith.subf %53, %58 : vector<16x32xf32>
    %60 = arith.mulf %59, %59 : vector<16x32xf32>
    %cst_28 = arith.constant dense<0.000000e+00> : vector<16xf32>
    %61 = vector.multi_reduction <add>, %60, %cst_28 [1] : vector<16x32xf32> to vector<16xf32>
    %62 = vector.shape_cast %61 : vector<16xf32> to vector<16x1xf32>
    %cst_29 = arith.constant 3.200000e+01 : f32
    %63 = vector.broadcast %cst_29 : f32 to vector<16x1xf32>
    %64 = arith.divf %62, %63 : vector<16x1xf32>
    %65 = vector.broadcast %57 : vector<16x1xf32> to vector<16x32xf32>
    %66 = arith.subf %53, %65 : vector<16x32xf32>
    %cst_30 = arith.constant 9.99999974E-6 : f32
    %67 = vector.broadcast %cst_30 : f32 to vector<16x1xf32>
    %68 = arith.addf %64, %67 : vector<16x1xf32>
    %69 = math.rsqrt %68 : vector<16x1xf32>
    %70 = vector.broadcast %69 : vector<16x1xf32> to vector<16x32xf32>
    %71 = arith.mulf %66, %70 : vector<16x32xf32>
    %72 = vector.broadcast %20 : vector<1x32xf32> to vector<16x32xf32>
    %73 = arith.mulf %71, %72 : vector<16x32xf32>
    %74 = vector.broadcast %21 : vector<1x32xf32> to vector<16x32xf32>
    %75 = arith.addf %73, %74 : vector<16x32xf32>
    %cst_31 = arith.constant dense<0.000000e+00> : vector<16x128xf32>
    %76 = tpu.matmul %75, %16, %cst_31 {dimension_numbers = #tpu.dot_dimension_numbers<[1], [0], [0], [1], [0, 0, 1, 1], [], []>} : vector<16x32xf32>, vector<32x128xf32>, vector<16x128xf32> -> vector<16x128xf32>
    %77 = vector.broadcast %22 : vector<1x128xf32> to vector<16x128xf32>
    %78 = arith.addf %76, %77 : vector<16x128xf32>
    %cst_32 = arith.constant 0.000000e+00 : f32
    %79 = vector.broadcast %cst_32 : f32 to vector<16x128xf32>
    %80 = arith.maximumf %78, %79 : vector<16x128xf32>
    %cst_33 = arith.constant dense<0.000000e+00> : vector<16x32xf32>
    %81 = tpu.matmul %80, %17, %cst_33 {dimension_numbers = #tpu.dot_dimension_numbers<[1], [0], [0], [1], [0, 0, 1, 1], [], []>} : vector<16x128xf32>, vector<128x32xf32>, vector<16x32xf32> -> vector<16x32xf32>
    %82 = vector.broadcast %23 : vector<1x32xf32> to vector<16x32xf32>
    %83 = arith.addf %81, %82 : vector<16x32xf32>
    %84 = arith.addf %83, %75 : vector<16x32xf32>
    %cst_34 = arith.constant dense<0.000000e+00> : vector<16xf32>
    %85 = vector.multi_reduction <add>, %84, %cst_34 [1] : vector<16x32xf32> to vector<16xf32>
    %86 = vector.shape_cast %85 : vector<16xf32> to vector<16x1xf32>
    %cst_35 = arith.constant 3.200000e+01 : f32
    %87 = vector.broadcast %cst_35 : f32 to vector<16x1xf32>
    %88 = arith.divf %86, %87 : vector<16x1xf32>
    %89 = vector.broadcast %88 : vector<16x1xf32> to vector<16x32xf32>
    %90 = arith.subf %84, %89 : vector<16x32xf32>
    %91 = arith.mulf %90, %90 : vector<16x32xf32>
    %cst_36 = arith.constant dense<0.000000e+00> : vector<16xf32>
    %92 = vector.multi_reduction <add>, %91, %cst_36 [1] : vector<16x32xf32> to vector<16xf32>
    %93 = vector.shape_cast %92 : vector<16xf32> to vector<16x1xf32>
    %cst_37 = arith.constant 3.200000e+01 : f32
    %94 = vector.broadcast %cst_37 : f32 to vector<16x1xf32>
    %95 = arith.divf %93, %94 : vector<16x1xf32>
    %96 = vector.broadcast %88 : vector<16x1xf32> to vector<16x32xf32>
    %97 = arith.subf %84, %96 : vector<16x32xf32>
    %cst_38 = arith.constant 9.99999974E-6 : f32
    %98 = vector.broadcast %cst_38 : f32 to vector<16x1xf32>
    %99 = arith.addf %95, %98 : vector<16x1xf32>
    %100 = math.rsqrt %99 : vector<16x1xf32>
    %101 = vector.broadcast %100 : vector<16x1xf32> to vector<16x32xf32>
    %102 = arith.mulf %97, %101 : vector<16x32xf32>
    %103 = vector.broadcast %24 : vector<1x32xf32> to vector<16x32xf32>
    %104 = arith.mulf %102, %103 : vector<16x32xf32>
    %105 = vector.broadcast %25 : vector<1x32xf32> to vector<16x32xf32>
    %106 = arith.addf %104, %105 : vector<16x32xf32>
    %c472 = arith.constant 472 : index
    %c0_39 = arith.constant 0 : index
    %107 = vector.load %arg0[%c472, %c0_39] : memref<704x128xf32, #tpu.memory_space<vmem>>, vector<32x96xf32>
    %c504 = arith.constant 504 : index
    %c0_40 = arith.constant 0 : index
    %108 = vector.load %arg0[%c504, %c0_40] : memref<704x128xf32, #tpu.memory_space<vmem>>, vector<32x32xf32>
    %c536 = arith.constant 536 : index
    %c0_41 = arith.constant 0 : index
    %109 = vector.load %arg0[%c536, %c0_41] : memref<704x128xf32, #tpu.memory_space<vmem>>, vector<32x128xf32>
    %c568 = arith.constant 568 : index
    %c0_42 = arith.constant 0 : index
    %110 = vector.load %arg0[%c568, %c0_42] : memref<704x128xf32, #tpu.memory_space<vmem>>, vector<128x32xf32>
    %c696 = arith.constant 696 : index
    %c0_43 = arith.constant 0 : index
    %111 = vector.load %arg0[%c696, %c0_43] : memref<704x128xf32, #tpu.memory_space<vmem>>, vector<8x128xf32>
    %112 = vector.extract_strided_slice %111 {offsets = [0, 0], sizes = [1, 32], strides = [1, 1]} : vector<8x128xf32> to vector<1x32xf32>
    %113 = vector.extract_strided_slice %111 {offsets = [1, 0], sizes = [1, 32], strides = [1, 1]} : vector<8x128xf32> to vector<1x32xf32>
    %114 = vector.extract_strided_slice %111 {offsets = [2, 0], sizes = [1, 32], strides = [1, 1]} : vector<8x128xf32> to vector<1x32xf32>
    %115 = vector.extract_strided_slice %111 {offsets = [3, 0], sizes = [1, 128], strides = [1, 1]} : vector<8x128xf32> to vector<1x128xf32>
    %116 = vector.extract_strided_slice %111 {offsets = [4, 0], sizes = [1, 32], strides = [1, 1]} : vector<8x128xf32> to vector<1x32xf32>
    %117 = vector.extract_strided_slice %111 {offsets = [5, 0], sizes = [1, 32], strides = [1, 1]} : vector<8x128xf32> to vector<1x32xf32>
    %118 = vector.extract_strided_slice %111 {offsets = [6, 0], sizes = [1, 32], strides = [1, 1]} : vector<8x128xf32> to vector<1x32xf32>
    %cst_44 = arith.constant dense<0.000000e+00> : vector<16x96xf32>
    %119 = tpu.matmul %106, %107, %cst_44 {dimension_numbers = #tpu.dot_dimension_numbers<[1], [0], [0], [1], [0, 0, 1, 1], [], []>} : vector<16x32xf32>, vector<32x96xf32>, vector<16x96xf32> -> vector<16x96xf32>
    %120 = vector.extract_strided_slice %119 {offsets = [0, 64], sizes = [16, 32], strides = [1, 1]} : vector<16x96xf32> to vector<16x32xf32>
    %121 = vector.extract_strided_slice %119 {offsets = [0, 0], sizes = [16, 64], strides = [1, 1]} : vector<16x96xf32> to vector<16x64xf32>
    %cst_45 = arith.constant dense<0.000000e+00> : vector<64x64xf32>
    %122 = tpu.matmul %3, %121, %cst_45 {dimension_numbers = #tpu.dot_dimension_numbers<[1], [0], [0], [1], [0, 0, 1, 1], [], []>} : vector<64x16xf32>, vector<16x64xf32>, vector<64x64xf32> -> vector<64x64xf32>
    %123 = vector.extract_strided_slice %122 {offsets = [0, 0], sizes = [64, 32], strides = [1, 1]} : vector<64x64xf32> to vector<64x32xf32>
    %124 = arith.mulf %123, %4 : vector<64x32xf32>
    %125 = vector.extract_strided_slice %122 {offsets = [0, 32], sizes = [64, 32], strides = [1, 1]} : vector<64x64xf32> to vector<64x32xf32>
    %126 = arith.mulf %125, %4 : vector<64x32xf32>
    "tpu.trace_start"() <{level = 10 : i32, message = "qd,kd->qk"}> : () -> ()
    %cst_46 = arith.constant dense<0.000000e+00> : vector<16x64xf32>
    %127 = tpu.matmul %120, %126, %cst_46 {dimension_numbers = #tpu.dot_dimension_numbers<[1], [1], [0], [0], [0, 0, 1, 0], [], []>} : vector<16x32xf32>, vector<64x32xf32>, vector<16x64xf32> -> vector<16x64xf32>
    %cst_47 = arith.constant -1.000000e+20 : f32
    "tpu.trace_stop"() : () -> ()
    %128 = vector.broadcast %cst_47 : f32 to vector<16x64xf32>
    %129 = arith.select %8, %128, %127 : vector<16x64xi1>, vector<16x64xf32>
    %cst_48 = arith.constant 0.176776692 : f32
    %130 = vector.broadcast %cst_48 : f32 to vector<16x64xf32>
    %131 = arith.mulf %129, %130 : vector<16x64xf32>
    %cst_49 = arith.constant dense<0xFF800000> : vector<16xf32>
    %132 = vector.multi_reduction <maximumf>, %131, %cst_49 [1] : vector<16x64xf32> to vector<16xf32>
    %133 = vector.shape_cast %132 : vector<16xf32> to vector<16x1xf32>
    %134 = vector.broadcast %133 : vector<16x1xf32> to vector<16x64xf32>
    %135 = arith.subf %131, %134 : vector<16x64xf32>
    %136 = math.exp %135 : vector<16x64xf32>
    %137 = arith.mulf %136, %2 : vector<16x64xf32>
    %cst_50 = arith.constant dense<0.000000e+00> : vector<16x64xf32>
    %138 = tpu.matmul %137, %5, %cst_50 {dimension_numbers = #tpu.dot_dimension_numbers<[1], [0], [0], [1], [0, 0, 1, 1], [], []>} : vector<16x64xf32>, vector<64x64xf32>, vector<16x64xf32> -> vector<16x64xf32>
    %139 = arith.addf %138, %10 : vector<16x64xf32>
    %140 = tpu.reciprocal %139 {approx = true} : vector<16x64xf32> -> vector<16x64xf32>
    %141 = arith.mulf %137, %140 : vector<16x64xf32>
    %cst_51 = arith.constant dense<0.000000e+00> : vector<16x32xf32>
    %142 = tpu.matmul %141, %124, %cst_51 {dimension_numbers = #tpu.dot_dimension_numbers<[1], [0], [0], [1], [0, 0, 1, 1], [], []>} : vector<16x64xf32>, vector<64x32xf32>, vector<16x32xf32> -> vector<16x32xf32>
    %cst_52 = arith.constant dense<0.000000e+00> : vector<16x32xf32>
    %143 = tpu.matmul %142, %108, %cst_52 {dimension_numbers = #tpu.dot_dimension_numbers<[1], [0], [0], [1], [0, 0, 1, 1], [], []>} : vector<16x32xf32>, vector<32x32xf32>, vector<16x32xf32> -> vector<16x32xf32>
    %144 = vector.broadcast %112 : vector<1x32xf32> to vector<16x32xf32>
    %145 = arith.addf %143, %144 : vector<16x32xf32>
    %146 = arith.addf %145, %106 : vector<16x32xf32>
    %cst_53 = arith.constant dense<0.000000e+00> : vector<16xf32>
    %147 = vector.multi_reduction <add>, %146, %cst_53 [1] : vector<16x32xf32> to vector<16xf32>
    %148 = vector.shape_cast %147 : vector<16xf32> to vector<16x1xf32>
    %cst_54 = arith.constant 3.200000e+01 : f32
    %149 = vector.broadcast %cst_54 : f32 to vector<16x1xf32>
    %150 = arith.divf %148, %149 : vector<16x1xf32>
    %151 = vector.broadcast %150 : vector<16x1xf32> to vector<16x32xf32>
    %152 = arith.subf %146, %151 : vector<16x32xf32>
    %153 = arith.mulf %152, %152 : vector<16x32xf32>
    %cst_55 = arith.constant dense<0.000000e+00> : vector<16xf32>
    %154 = vector.multi_reduction <add>, %153, %cst_55 [1] : vector<16x32xf32> to vector<16xf32>
    %155 = vector.shape_cast %154 : vector<16xf32> to vector<16x1xf32>
    %cst_56 = arith.constant 3.200000e+01 : f32
    %156 = vector.broadcast %cst_56 : f32 to vector<16x1xf32>
    %157 = arith.divf %155, %156 : vector<16x1xf32>
    %158 = vector.broadcast %150 : vector<16x1xf32> to vector<16x32xf32>
    %159 = arith.subf %146, %158 : vector<16x32xf32>
    %cst_57 = arith.constant 9.99999974E-6 : f32
    %160 = vector.broadcast %cst_57 : f32 to vector<16x1xf32>
    %161 = arith.addf %157, %160 : vector<16x1xf32>
    %162 = math.rsqrt %161 : vector<16x1xf32>
    %163 = vector.broadcast %162 : vector<16x1xf32> to vector<16x32xf32>
    %164 = arith.mulf %159, %163 : vector<16x32xf32>
    %165 = vector.broadcast %113 : vector<1x32xf32> to vector<16x32xf32>
    %166 = arith.mulf %164, %165 : vector<16x32xf32>
    %167 = vector.broadcast %114 : vector<1x32xf32> to vector<16x32xf32>
    %168 = arith.addf %166, %167 : vector<16x32xf32>
    %cst_58 = arith.constant dense<0.000000e+00> : vector<16x128xf32>
    %169 = tpu.matmul %168, %109, %cst_58 {dimension_numbers = #tpu.dot_dimension_numbers<[1], [0], [0], [1], [0, 0, 1, 1], [], []>} : vector<16x32xf32>, vector<32x128xf32>, vector<16x128xf32> -> vector<16x128xf32>
    %170 = vector.broadcast %115 : vector<1x128xf32> to vector<16x128xf32>
    %171 = arith.addf %169, %170 : vector<16x128xf32>
    %cst_59 = arith.constant 0.000000e+00 : f32
    %172 = vector.broadcast %cst_59 : f32 to vector<16x128xf32>
    %173 = arith.maximumf %171, %172 : vector<16x128xf32>
    %cst_60 = arith.constant dense<0.000000e+00> : vector<16x32xf32>
    %174 = tpu.matmul %173, %110, %cst_60 {dimension_numbers = #tpu.dot_dimension_numbers<[1], [0], [0], [1], [0, 0, 1, 1], [], []>} : vector<16x128xf32>, vector<128x32xf32>, vector<16x32xf32> -> vector<16x32xf32>
    %175 = vector.broadcast %116 : vector<1x32xf32> to vector<16x32xf32>
    %176 = arith.addf %174, %175 : vector<16x32xf32>
    %177 = arith.addf %176, %168 : vector<16x32xf32>
    %cst_61 = arith.constant dense<0.000000e+00> : vector<16xf32>
    %178 = vector.multi_reduction <add>, %177, %cst_61 [1] : vector<16x32xf32> to vector<16xf32>
    %179 = vector.shape_cast %178 : vector<16xf32> to vector<16x1xf32>
    %cst_62 = arith.constant 3.200000e+01 : f32
    %180 = vector.broadcast %cst_62 : f32 to vector<16x1xf32>
    %181 = arith.divf %179, %180 : vector<16x1xf32>
    %182 = vector.broadcast %181 : vector<16x1xf32> to vector<16x32xf32>
    %183 = arith.subf %177, %182 : vector<16x32xf32>
    %184 = arith.mulf %183, %183 : vector<16x32xf32>
    %cst_63 = arith.constant dense<0.000000e+00> : vector<16xf32>
    %185 = vector.multi_reduction <add>, %184, %cst_63 [1] : vector<16x32xf32> to vector<16xf32>
    %186 = vector.shape_cast %185 : vector<16xf32> to vector<16x1xf32>
    %cst_64 = arith.constant 3.200000e+01 : f32
    %187 = vector.broadcast %cst_64 : f32 to vector<16x1xf32>
    %188 = arith.divf %186, %187 : vector<16x1xf32>
    %189 = vector.broadcast %181 : vector<16x1xf32> to vector<16x32xf32>
    %190 = arith.subf %177, %189 : vector<16x32xf32>
    %cst_65 = arith.constant 9.99999974E-6 : f32
    %191 = vector.broadcast %cst_65 : f32 to vector<16x1xf32>
    %192 = arith.addf %188, %191 : vector<16x1xf32>
    %193 = math.rsqrt %192 : vector<16x1xf32>
    %194 = vector.broadcast %193 : vector<16x1xf32> to vector<16x32xf32>
    %195 = arith.mulf %190, %194 : vector<16x32xf32>
    %196 = vector.broadcast %117 : vector<1x32xf32> to vector<16x32xf32>
    %197 = arith.mulf %195, %196 : vector<16x32xf32>
    %198 = vector.broadcast %118 : vector<1x32xf32> to vector<16x32xf32>
    %199 = arith.addf %197, %198 : vector<16x32xf32>
    %c0_66 = arith.constant 0 : index
    %c0_67 = arith.constant 0 : index
    %200 = vector.load %arg3[%c0_66, %c0_67] : memref<16x32xf32, #tpu.memory_space<vmem>>, vector<16x32xf32>
    tpu.vector_store %arg3[%c0_66, %c0_67], %199 {strides = array<i32>} : memref<16x32xf32, #tpu.memory_space<vmem>>, vector<16x32xf32>,
    return
  }
}

</mosaic_0001>

<bundles_post_ra>
// kernel: encoder_forward.1
= control target key start
LH: loop header
LB: loop body
LE: loop exit
PB: predicated region body
PF: predicated region fallthrough
CT: control target
= control target key end

     0   :  { %8 = vsyncpa [#allocation3], 0  ;;  %s3277_s0 = inlined_call_operand.hbm [shape: f32[704,128], index: 0, kind: input, shape index: {}]   ;;  %s3278_s1 = inlined_call_operand.vmem [shape: f32[16,16], index: 1, kind: input, shape index: {}]   ;;  %s3279_s2 = inlined_call_operand.vmem [shape: f32[16,64], index: 2, kind: input, shape index: {}]   ;;  %s3280_s3 = inlined_call_operand.hbm [shape: f32[16,32], index: 3, kind: output, shape index: {}]  }
   0x1   :  { %9 = vsyncpa [#allocation4], 0  ;;  %s2835_s12 = smov [#allocation2]   ;;  %s2787_s16 = scalar_lea.hbm %s3277_s0, 11264 }
   0x2   :  { %s15_s13 = sshll.u32 %s2835_s12, 4  ;;  %p2788_p0 = scmp.ne.s32.totalorder %s3277_s0, %s2787_s16  ;;  %s16_s13 = int_to_ptr.vmem [resolvable:$true] %s15_s13 }
   0x3   :  { %p2791_p1 = scmp.lt.u32.totalorder %s2787_s16, %s3277_s0 }
   0x5   :  { %p2793_p2 = pnand %p2791_p1, %p2788_p0 }
   0x7   :  { %2796 = shalt.err (!%p2793_p2)
}
   0x8   :  { %s2797_s21 = scalar_lea.vmem %s16_s13, 11264  ;;  %p2802_p4 = scmp.lt.s32.totalorder %s16_s13, %s16_s13 }
   0x9   :  { %p2798_p3 = scmp.ne.s32.totalorder %s16_s13, %s2797_s21  ;;  %p2803_p5 = scmp.lt.s32.totalorder %s2797_s21, %s2797_s21 }
   0xb   :  { %p2804_p6 = por %p2803_p5, %p2802_p4 }
   0xd   :  { %p2805_p7 = pnand %p2804_p6, %p2798_p3 }
   0xf   :  { %2808 = shalt.err (!%p2805_p7)
}
  0x10   :  { %s2836_s22 = smov 128   ;;  %s2837_s23 = smov 8  }
  0x11   :  { %21 = dma.hbm_to_vmem [thread:$0]  %s3277_s0, 11264, %s16_s13, [#allocation3], %s2836_s22, %s2836_s22, %s2837_s23  }
  0x12   :  { %2831 = dma.done.wait [#allocation3], 11264  }
  0x13   :  { %2832 = vsyncadd [#allocation3], 4294956032  ;;  %vm67_vm0 = vcmask 130048   ;;  %v31_v0 = vld [vmem:[#allocation2 + $0x10] sm:$0xff]  ;;  %v32_v1 = vld [vmem:[#allocation2 + $0x18] sm:$0xff]  ;;  %vm178_vm1 = vcmask 261120  }
  0x14   :  { %v65_v2 = vld [vmem:[%s3278_s1] sm:$0xff]  ;;  %v2472_v3 = vpack.c.bf16 %v32_v1, %v31_v0  ;;  %v149_v4 = vld [vmem:[#allocation2 + $0xf0] sm:$0xff]  ;;  %v150_v5 = vld [vmem:[#allocation2 + $0xf8] sm:$0xff]  ;;  %s2838_s0 = smov 32   ;;  %s2840_s30 = smov 64   ;;  %vm566_vm5 = vcmask 523264  }
  0x15   :  { %2187 = vmatprep.mubr.msk.f32.mxu0 %vm67_vm0, %v65_v2  ;;  %v2476_v6 = vpack.c.bf16 %v150_v5, %v149_v4  ;;  %v66_v7 = vld [vmem:[%s3278_s1 + $0x8] sm:$0xff]  ;;  %v151_v8 = vld [vmem:[#allocation2 + $0x100] sm:$0xff]  ;;  %v2893_v17 = vld [vmem:[#allocation2 + $0x30] sm:$0xff]  ;;  %s2839_s1 = smov 96  }
  0x16   :  { %2473 = vmatprep.subr.bf16.mxu0 %v2472_v3  ;;  %v152_v9 = vld [vmem:[#allocation2 + $0x108] sm:$0xff]  ;;  %v29_v11 = vld [vmem:[#allocation2] sm:$0xff]  ;;  %v2897_v18 = vld [vmem:[#allocation2 + $0x70] sm:$0xff] }
  0x17   :  { %2475 = vmatpush3.bf16.msra.mxu0 %v2472_v3  ;;  %2477 = vmatprep.subr.bf16.mxu1 %v2476_v6  ;;  %v2480_v10 = vpack.c.bf16 %v152_v9, %v151_v8  ;;  %v30_v12 = vld [vmem:[#allocation2 + $0x8] sm:$0xff]  ;;  %v2899_v19 = vld [vmem:[#allocation2 + $0x80] sm:$0xff]  ;;  %v2903_v20 = vld [vmem:[#allocation2 + $0x78] sm:$0xff] }
  0x18   :  { %2479 = vmatpush3.bf16.msra.mxu1 %v2476_v6  ;;  %405 = vrot.lane.b32.xlu0 %v2897_v18, %s2838_s0  ;;  %v2905_v21 = vld [vmem:[#allocation2 + $0x88] sm:$0xff]  ;;  %v2909_v22 = vld [vmem:[#allocation2 + $0x98] sm:$0xff]  ;;  %v2911_v23 = vld [vmem:[#allocation2 + $0x90] sm:$0xff] }
  0x19   :  { %2481 = vmatprep.subr.bf16.mxu1 %v2480_v10  ;;  %409 = vrot.lane.b32.xlu1 %v2899_v19, %s2838_s0  ;;  %v2915_v24 = vld [vmem:[#allocation2 + $0xa8] sm:$0xff]  ;;  %v2917_v25 = vld [vmem:[#allocation2 + $0xa0] sm:$0xff]  ;;  %v2927_v29 = vld [vmem:[#allocation2 + $0x38] sm:$0xff] }
  0x1a   :  { %2188 = vmatmul.mubr.msk.f32.vlgmr.msra.gmra.mrb[0].mxu0 %vm67_vm0, %v66_v7  ;;  %v2929_v30 = vld [vmem:[#allocation2 + $0x40] sm:$0xff]  ;;  %v2935_v31 = vld [vmem:[#allocation2 + $0x48] sm:$0xff]  ;;  %v2937_v32 = vld [vmem:[#allocation2 + $0x50] sm:$0xff] }
  0x1b   :  { %2205 = vmatprep.mubr.msk.f32.mxu0 %vm67_vm0, %v2893_v17  ;;  %v2943_v33 = vld [vmem:[#allocation2 + $0x58] sm:$0xff]  ;;  %v2945_v34 = vld [vmem:[#allocation2 + $0x60] sm:$0xff]  ;;  %v2951_v35 = vld [vmem:[#allocation2 + $0x68] sm:$0xff] }
  0x1c   :  { %2483 = vmatpush3.bf16.msra.mxu1 %v2480_v10  ;;  %407 = vrot.lane.b32.xlu0 %v2903_v20, %s2838_s0  ;;  %vm2997_vm2 = vmpackc.low %vm178_vm1, %vm178_vm1 }
  0x1d   :  { %411 = vrot.lane.b32.xlu1 %v2905_v21, %s2838_s0 }
  0x20   :  { %413 = vrot.lane.b32.xlu0 %v2911_v23, %s2838_s0 }
  0x21   :  { %415 = vrot.lane.b32.xlu1 %v2909_v22, %s2838_s0 }
  0x24   :  { %417 = vrot.lane.b32.xlu0 %v2917_v25, %s2838_s0 }
  0x25   :  { %419 = vrot.lane.b32.xlu1 %v2915_v24, %s2838_s0 }
  0x8a   :  { %v2955_v36 = vpop.permute.xlu0 %405 }
  0x8b   :  { %v2957_v37 = vpop.permute.xlu1 %409 }
  0x8e   :  { %v2959_v38 = vpop.permute.xlu0 %407 }
  0x8f   :  { %v2961_v39 = vpop.permute.xlu1 %411 }
  0x92   :  { %v2971_v53 = vpop.permute.xlu0 %413 }
  0x93   :  { %v2967_v49 = vpop.permute.xlu1 %415 }
  0x96   :  { %v2983_v1 = vpop.permute.xlu0 %417 }
  0x97   :  { %v2981_v0 = vpop.permute.xlu1 %419 }
  0xed   :  { %v2189_v13 = vpop.f32.mrb[0].mxu0 }
  0xee   :  { %v140_v14 = vpop.f32.mrb[1].mxu0  ;;  %v2887_v16 = vadd.f32 %v2189_v13, %v30_v12 }
  0xef   :  { %v2885_v15 = vadd.f32 %v140_v14, %v29_v11 }
  0xf1   :  { %2198 = vmatprep.mubr.msk.f32.mxu1 %vm178_vm1, %v2885_v15 }
  0xf2   :  { %2199 = vmatmul.mubr.msk.f32.vlgmr.msra.gmra.mrb[0].mxu1 %vm178_vm1, %v2887_v16 }
 0x1c5   :  { %v2921_v26 = vpop.f32.mrb[0].mxu1 }
 0x1c6   :  { %v2923_v27 = vpop.f32.mrb[1].mxu1 }
 0x1c7   :  { %v2484_v28 = vpack.c.bf16 %v2921_v26, %v2923_v27 }
 0x1c9   :  { %2485 = vmatprep.subr.bf16.mxu0 %v2484_v28 }
 0x1ca   :  { %2487 = vmatpush3.bf16.msra.mxu0 %v2484_v28 }
 0x1cd   :  { %2206 = vmatmul.mubr.msk.f32.vlgmr.msra.gmra.mrb[2].mxu0 %vm67_vm0, %v2927_v29 }
 0x1ce   :  { %2208 = vmatprep.mubr.msk.f32.mxu0 %vm67_vm0, %v2929_v30 }
 0x1d1   :  { %2209 = vmatmul.mubr.msk.f32.gmra.mrb[4].mxu0 %vm67_vm0, %v2935_v31 }
 0x1d2   :  { %2211 = vmatprep.mubr.msk.f32.mxu0 %vm67_vm0, %v2937_v32 }
 0x1d5   :  { %2212 = vmatmul.mubr.msk.f32.gmra.mrb[6].mxu0 %vm67_vm0, %v2943_v33 }
 0x1d6   :  { %2214 = vmatprep.mubr.msk.f32.mxu0 %vm67_vm0, %v2945_v34 }
 0x1d9   :  { %2215 = vmatmul.mubr.msk.f32.gmra.mrb[8].mxu0 %vm67_vm0, %v2951_v35 }
 0x2a0   :  { %v2207_v40 = vpop.f32.mrb[2].mxu0 }
 0x2a1   :  { %v390_v41 = vmul.f32 %v2207_v40, %v2903_v20  ;;  %v430_v42 = vmul.f32 %v2207_v40, %v2959_v38  ;;  %v350_v43 = vpop.f32.mrb[3].mxu0 }
 0x2a2   :  { %v429_v44 = vmul.f32 %v2955_v36, %v350_v43  ;;  %v389_v45 = vmul.f32 %v350_v43, %v2897_v18 }
 0x2a4   :  { %v2715_v46 = vpack.i.bf16 %v430_v42, %v429_v44  ;;  %v2528_v47 = vpack.c.bf16 %v390_v41, %v389_v45  ;;  %v2210_v48 = vpop.f32.mrb[4].mxu0 }
 0x2a5   :  { %v392_v50 = vmul.f32 %v2210_v48, %v2905_v21  ;;  %v432_v51 = vmul.f32 %v2210_v48, %v2961_v39  ;;  %v360_v52 = vpop.f32.mrb[5].mxu0 }
 0x2a6   :  { %v431_v54 = vmul.f32 %v2957_v37, %v360_v52  ;;  %v391_v55 = vmul.f32 %v360_v52, %v2899_v19  ;;  %2716 = vrot.lane.b32.xlu0 %v2715_v46, %s2839_s1  ;;  %2529 = vmatprep.subr.bf16.mxu1 %v2528_v47 }
 0x2a7   :  { %2531 = vmatpush3.bf16.msra.mxu1 %v2528_v47 }
 0x2a8   :  { %v2720_v56 = vpack.i.bf16 %v432_v51, %v431_v54  ;;  %v2532_v57 = vpack.c.bf16 %v392_v50, %v391_v55  ;;  %v2213_v58 = vpop.f32.mrb[6].mxu0  ;;  %v3022_v55 = vld [vmem:[%s3279_s2 + $0x8] sm:$0xff] }
 0x2a9   :  { %v394_v59 = vmul.f32 %v2213_v58, %v2909_v22  ;;  %v434_v60 = vmul.f32 %v2213_v58, %v2967_v49  ;;  %v370_v61 = vpop.f32.mrb[7].mxu0  ;;  %vm62_vm3 = vcmp.eq.f32.partialorder %v3022_v55, 0.0 }
 0x2aa   :  { %v433_v62 = vmul.f32 %v2971_v53, %v370_v61  ;;  %v393_v63 = vmul.f32 %v370_v61, %v2911_v23  ;;  %2721 = vrot.lane.b32.xlu1 %v2720_v56, %s2839_s1  ;;  %2533 = vmatprep.subr.bf16.mxu1 %v2532_v57  ;;  %v3027_v56 = vld [vmem:[%s3279_s2] sm:$0xff]  ;;  %s2841_s2 = smov [#allocation5]  }
 0x2ab   :  { %2535 = vmatpush3.bf16.msra.mxu1 %v2532_v57  ;;  %vm61_vm4 = vcmp.eq.f32.partialorder %v3027_v56, 0.0  ;;  %s1957_s8 = sshll.u32 %s2841_s2, 4  ;;  %s1958_s8 = int_to_ptr.vmem [resolvable:$true] %s1957_s8 }
 0x2ac   :  { %v2725_v2 = vpack.i.bf16 %v434_v60, %v433_v62  ;;  %v2536_v3 = vpack.c.bf16 %v394_v59, %v393_v63  ;;  %v2216_v4 = vpop.f32.mrb[8].mxu0  ;;  %s2809_s9 = scalar_lea.vmem %s1958_s8, 256  ;;  %p2814_p9 = scmp.lt.s32.totalorder %s1958_s8, %s1958_s8 }
 0x2ad   :  { %v396_v5 = vmul.f32 %v2216_v4, %v2915_v24  ;;  %v436_v6 = vmul.f32 %v2216_v4, %v2981_v0  ;;  %v380_v7 = vpop.f32.mrb[9].mxu0  ;;  %v52_v4 = vld [vmem:[#allocation2 + $0xb8] sm:$0xff]  ;;  %p2810_p8 = scmp.ne.s32.totalorder %s1958_s8, %s2809_s9  ;;  %p2815_p10 = scmp.lt.s32.totalorder %s2809_s9, %s2809_s9 }
 0x2ae   :  { %v435_v8 = vmul.f32 %v2983_v1, %v380_v7  ;;  %v395_v9 = vmul.f32 %v380_v7, %v2917_v25  ;;  %2726 = vrot.lane.b32.xlu0 %v2725_v2, %s2839_s1  ;;  %2537 = vmatprep.subr.bf16.mxu1 %v2536_v3  ;;  %v54_v7 = vld [vmem:[#allocation2 + $0xc8] sm:$0xff] }
 0x2af   :  { %2539 = vmatpush3.bf16.msra.mxu1 %v2536_v3  ;;  %v51_v3 = vld [vmem:[#allocation2 + $0xb0] sm:$0xff]  ;;  %p2816_p11 = por %p2815_p10, %p2814_p9 }
 0x2b0   :  { %v2730_v10 = vpack.i.bf16 %v436_v6, %v435_v8  ;;  %v2540_v11 = vpack.c.bf16 %v396_v5, %v395_v9  ;;  %v3037_v5 = vpack.c.bf16 %v52_v4, %v51_v3  ;;  %v53_v6 = vld [vmem:[#allocation2 + $0xc0] sm:$0xff]  ;;  %v55_v9 = vld [vmem:[#allocation2 + $0xd0] sm:$0xff] }
 0x2b1   :  { %v3041_v8 = vpack.c.bf16 %v54_v7, %v53_v6  ;;  %p2817_p12 = pnand %p2816_p11, %p2810_p8 }
 0x2b2   :  { %439 = vrot.lane.b32.xlu0 %v2923_v27, %s2840_s30  ;;  %2731 = vrot.lane.b32.xlu1 %v2730_v10, %s2839_s1  ;;  %v56_v10 = vld [vmem:[#allocation2 + $0xd8] sm:$0xff] }
 0x2b3   :  { %2541 = vmatprep.subr.bf16.mxu1 %v2540_v11 }
 0x2b4   :  { %2543 = vmatpush3.bf16.msra.mxu1 %v2540_v11  ;;  %v3043_v11 = vpack.c.bf16 %v56_v10, %v55_v9 }
 0x2b6   :  { %441 = vrot.lane.b32.xlu1 %v2921_v26, %s2840_s30 }
 0x318   :  { %v2717_v12 = vpop.permute.xlu0 %2716 }
 0x319   :  { %v2719_v13 = vunpack.i.h.bf16 %v2717_v12  ;;  %v2718_v14 = vunpack.i.l.bf16 %v2717_v12  ;;  %v57_v12 = vld [vmem:[#allocation2 + $0xe0] sm:$0xff] }
 0x31b   :  { %v2488_v40 = vpack.c.bf16 %v2719_v13, %v2718_v14  ;;  %v58_v13 = vld [vmem:[#allocation2 + $0xe8] sm:$0xff] }
 0x31c   :  { %v2722_v41 = vpop.permute.xlu1 %2721  ;;  %v3048_v14 = vpack.c.bf16 %v58_v13, %v57_v12  ;;  %v747_v13 = vlaneseq }
 0x31d   :  { %v2724_v42 = vunpack.i.h.bf16 %v2722_v41  ;;  %v2723_v27 = vunpack.i.l.bf16 %v2722_v41  ;;  %2490 = vmatprep.subr.msk.bf16.mxu0 %vm2997_vm2, %v2488_v40 }
 0x31e   :  { %2493 = vmatpush3.bf16.xpose.msk.msra.mxu0 %vm2997_vm2, %v2488_v40 }
 0x31f   :  { %v2494_v26 = vpack.c.bf16 %v2724_v42, %v2723_v27 }
 0x320   :  { %v2727_v43 = vpop.permute.xlu0 %2726 }
 0x321   :  { %v2729_v44 = vunpack.i.h.bf16 %v2727_v43  ;;  %v2728_v45 = vunpack.i.l.bf16 %v2727_v43  ;;  %2496 = vmatprep.subr.msk.bf16.mxu0 %vm2997_vm2, %v2494_v26 }
 0x323   :  { %v2500_v46 = vpack.c.bf16 %v2729_v44, %v2728_v45  ;;  %v3053_v44 = vld [vmem:[#allocation2 + $0x20] sm:$0xff] }
 0x324   :  { %v440_v47 = vpop.permute.xlu0 %439  ;;  %v2732_v48 = vpop.permute.xlu1 %2731 }
 0x325   :  { %2233 = vmatprep.mubr.msk.f32.mxu0 %vm178_vm1, %v440_v47  ;;  %v2734_v50 = vunpack.i.h.bf16 %v2732_v48  ;;  %v2733_v51 = vunpack.i.l.bf16 %v2732_v48 }
 0x326   :  { %2499 = vmatpush3.bf16.xpose.msk.msra.mxu0 %vm2997_vm2, %v2494_v26 }
 0x327   :  { %2502 = vmatprep.subr.msk.bf16.mxu0 %vm2997_vm2, %v2500_v46  ;;  %v2506_v52 = vpack.c.bf16 %v2734_v50, %v2733_v51  ;;  %v153_v51 = vld [vmem:[#allocation2 + $0x110] sm:$0xff] }
 0x328   :  { %v442_v54 = vpop.permute.xlu1 %441 }
 0x32e   :  { %2505 = vmatpush3.bf16.xpose.msk.msra.mxu0 %vm2997_vm2, %v2500_v46  ;;  %v3055_v46 = vld [vmem:[#allocation2 + $0x28] sm:$0xff] }
 0x32f   :  { %2508 = vmatprep.subr.msk.bf16.mxu0 %vm2997_vm2, %v2506_v52 }
 0x336   :  { %2511 = vmatpush3.bf16.xpose.msk.msra.mxu0 %vm2997_vm2, %v2506_v52  ;;  %v154_v52 = vld [vmem:[#allocation2 + $0x118] sm:$0xff] }
 0x337   :  { %2513 = vmatprep.subr.bf16.mxu0 %v3037_v5 }
 0x33d   :  { %2234 = vmatmul.mubr.msk.f32.vlgmr.msra.gmra.mrb[10].mxu0 %vm178_vm1, %v442_v54  ;;  %v155_v54 = vld [vmem:[#allocation2 + $0x120] sm:$0xff] }
 0x33e   :  { %2515 = vmatpush3.bf16.msra.mxu0 %v3037_v5 }
 0x33f   :  { %2517 = vmatprep.subr.bf16.mxu0 %v3041_v8 }
 0x342   :  { %2519 = vmatpush3.bf16.msra.mxu0 %v3041_v8 }
 0x343   :  { %2521 = vmatprep.subr.bf16.mxu0 %v3043_v11 }
 0x346   :  { %2523 = vmatpush3.bf16.msra.mxu0 %v3043_v11 }
 0x347   :  { %2525 = vmatprep.subr.bf16.mxu0 %v3048_v14 }
 0x34a   :  { %2527 = vmatpush3.bf16.msra.mxu0 %v3048_v14 }
 0x410   :  { %v2235_v57 = vpop.f32.mrb[10].mxu0 }
 0x411   :  { %v563_v58 = vsel %vm62_vm3, -1e+20, %v2235_v57  ;;  %v553_v59 = vpop.f32.mrb[11].mxu0  ;;  %v2544_v57 = vpack.c.bf16 %v154_v52, %v153_v51 }
 0x412   :  { %v565_v60 = vmul.f32 0.17677669, %v563_v58  ;;  %v562_v61 = vsel %vm61_vm4, -1e+20, %v553_v59  ;;  %v156_v58 = vld [vmem:[#allocation2 + $0x128] sm:$0xff] }
 0x413   :  { %v564_v62 = vmul.f32 0.17677669, %v562_v61  ;;  %v2548_v59 = vpack.c.bf16 %v156_v58, %v155_v54  ;;  %2545 = vmatprep.subr.bf16.mxu0 %v2544_v57  ;;  %v63_v61 = vsub.f32 1.0, %v3053_v44 }
 0x414   :  { %v570_v63 = vsel %vm566_vm5, %v565_v60, -inf }
 0x415   :  { %571 = vmax.xlane.f32.xlu1 %v570_v63  ;;  %v567_v2 = vsel %vm566_vm5, %v564_v62, -inf }
 0x416   :  { %568 = vmax.xlane.f32.xlu0 %v567_v2 }
 0x4a2   :  { %v572_v40 = vpop.xlane.xlu1 %571 }
 0x4a3   :  { %v574_v41 = vsub.f32 %v565_v60, %v572_v40  ;;  %v569_v42 = vpop.xlane.xlu0 %568  ;;  %v64_v60 = vsub.f32 1.0, %v3055_v46  ;;  %v3071_v40 = vshrl.u32 %v747_v13, 7  ;;  %v161_v13 = vld [vmem:[#allocation2 + $0x150] sm:$0xff] }
 0x4a4   :  { %v573_v27 = vsub.f32 %v564_v62, %v569_v42  ;;  %v3074_v42 = vld [vmem:[#allocation2 + $0x1d0] sm:$0xff] }
 0x4a5   :  { %v577_v26 = vmul.f32 1.442695, %v574_v41  ;;  %v749_v41 = vsub.s32 0, %v3071_v40 }
 0x4a6   :  { %v575_v43 = vmul.f32 1.442695, %v573_v27 }
 0x4a7   :  { %2755 = vpow2.f32 %v577_v26  ;;  %v750_v27 = vrot.slane %v3074_v42, %v749_v41 }
 0x4a8   :  { %2757 = vpow2.f32 %v575_v43 }
 0x4b1   :  { %v2756_v45 = vpop.eup %2755 }
 0x4b2   :  { %v2758_v47 = vpop.eup %2757  ;;  %v580_v50 = vmul.f32 %v2756_v45, %v3055_v46 }
 0x4b3   :  { %v579_v48 = vmul.f32 %v2758_v47, %v3053_v44 }
 0x4b5   :  { %2252 = vmatprep.mubr.msk.f32.mxu0 %vm566_vm5, %v579_v48 }
 0x4b6   :  { %2253 = vmatmul.mubr.msk.f32.vlgmr.msra.gmra.mrb[12].mxu0 %vm566_vm5, %v580_v50 }
 0x4b7   :  { %2547 = vmatpush3.bf16.msra.mxu0 %v2544_v57 }
 0x4b8   :  { %2549 = vmatprep.subr.bf16.mxu0 %v2548_v59 }
 0x4bb   :  { %2551 = vmatpush3.bf16.msra.mxu0 %v2548_v59 }
 0x589   :  { %v2254_v62 = vpop.f32.mrb[12].mxu0 }
 0x58a   :  { %v659_v63 = vadd.f32 %v2254_v62, %v64_v60  ;;  %v653_v2 = vpop.f32.mrb[13].mxu0 }
 0x58b   :  { %v654_v3 = vadd.f32 %v653_v2, %v63_v61 }
 0x58c   :  { %2759 = vrcp.f32 %v659_v63 }
 0x58d   :  { %2761 = vrcp.f32 %v654_v3 }
 0x596   :  { %v2760_v4 = vpop.eup %2759 }
 0x597   :  { %v2762_v6 = vpop.eup %2761  ;;  %v665_v9 = vmul.f32 %v2760_v4, %v580_v50  ;;  %v157_v4 = vld [vmem:[#allocation2 + $0x130] sm:$0xff] }
 0x598   :  { %v664_v7 = vmul.f32 %v2762_v6, %v579_v48  ;;  %v158_v6 = vld [vmem:[#allocation2 + $0x138] sm:$0xff] }
 0x59a   :  { %2271 = vmatprep.mubr.msk.f32.mxu1 %vm566_vm5, %v664_v7  ;;  %v2552_v7 = vpack.c.bf16 %v158_v6, %v157_v4  ;;  %v173_v4 = vld [vmem:[#allocation2 + $0x1b0] sm:$0xff]  ;;  %v174_v6 = vld [vmem:[#allocation2 + $0x1b8] sm:$0xff] }
 0x59b   :  { %2272 = vmatmul.mubr.msk.f32.vlgmr.msra.gmra.mrb[2].mxu1 %vm566_vm5, %v665_v9  ;;  %v159_v9 = vld [vmem:[#allocation2 + $0x140] sm:$0xff] }
 0x59c   :  { %2553 = vmatprep.subr.bf16.mxu1 %v2552_v7 }
 0x59d   :  { %2555 = vmatpush3.bf16.msra.mxu1 %v2552_v7  ;;  %v2584_v7 = vpack.c.bf16 %v174_v6, %v173_v4 }
 0x66e   :  { %v2273_v10 = vpop.f32.mrb[2].mxu1 }
 0x66f   :  { %v738_v12 = vpop.f32.mrb[3].mxu1 }
 0x670   :  { %2282 = vmatprep.mubr.msk.f32.mxu0 %vm178_vm1, %v738_v12 }
 0x671   :  { %2283 = vmatmul.mubr.msk.f32.vlgmr.msra.gmra.mrb[14].mxu0 %vm178_vm1, %v2273_v10  ;;  %v160_v10 = vld [vmem:[#allocation2 + $0x148] sm:$0xff] }
 0x672   :  { %v2556_v12 = vpack.c.bf16 %v160_v10, %v159_v9 }
 0x674   :  { %2557 = vmatprep.subr.bf16.mxu1 %v2556_v12 }
 0x675   :  { %2559 = vmatpush3.bf16.msra.mxu1 %v2556_v12 }
 0x744   :  { %v2284_v26 = vpop.f32.mrb[14].mxu0 }
 0x745   :  { %v823_v43 = vpop.f32.mrb[15].mxu0  ;;  %v829_v45 = vadd.f32 %v2284_v26, %v750_v27  ;;  %v163_v26 = vld [vmem:[#allocation2 + $0x160] sm:$0xff] }
 0x746   :  { %v824_v47 = vadd.f32 %v823_v43, %v750_v27  ;;  %v162_v27 = vld [vmem:[#allocation2 + $0x158] sm:$0xff] }
 0x747   :  { %v833_v51 = vadd.f32 %v829_v45, %v2887_v16  ;;  %v2560_v43 = vpack.c.bf16 %v162_v27, %v161_v13  ;;  %v164_v45 = vld [vmem:[#allocation2 + $0x168] sm:$0xff] }
 0x748   :  { %v832_v48 = vadd.f32 %v824_v47, %v2885_v15  ;;  %v2564_v47 = vpack.c.bf16 %v164_v45, %v163_v26  ;;  %v869_v45 = vsub.s32 2, %v3071_v40 }
 0x749   :  { %v837_v52 = vsel %vm178_vm1, %v833_v51, 0.0  ;;  %2561 = vmatprep.subr.bf16.mxu0 %v2560_v43 }
 0x74a   :  { %v834_v50 = vsel %vm178_vm1, %v832_v48, 0.0  ;;  %2563 = vmatpush3.bf16.msra.mxu0 %v2560_v43  ;;  %v863_v43 = vsub.s32 1, %v3071_v40 }
 0x74b   :  { %835 = vadd.xlane.f32.xlu0 %v834_v50  ;;  %v166_v50 = vld [vmem:[#allocation2 + $0x178] sm:$0xff]  ;;  %2565 = vmatprep.subr.bf16.mxu0 %v2564_v47 }
 0x74e   :  { %2567 = vmatpush3.bf16.msra.mxu0 %v2564_v47  ;;  %v864_v47 = vrot.slane %v3074_v42, %v863_v43 }
 0x74f   :  { %838 = vadd.xlane.f32.xlu0 %v837_v52  ;;  %v167_v52 = vld [vmem:[#allocation2 + $0x180] sm:$0xff] }
 0x7d8   :  { %v836_v54 = vpop.xlane.xlu0 %835 }
 0x7d9   :  { %v841_v57 = vmul.f32 0.03125, %v836_v54  ;;  %v168_v54 = vld [vmem:[#allocation2 + $0x188] sm:$0xff] }
 0x7db   :  { %v3083_v58 = vsub.f32 %v832_v48, %v841_v57  ;;  %v165_v48 = vld [vmem:[#allocation2 + $0x170] sm:$0xff]  ;;  %v2572_v57 = vpack.c.bf16 %v168_v54, %v167_v52 }
 0x7dc   :  { %v839_v59 = vpop.xlane.xlu0 %838 }
 0x7dd   :  { %v842_v62 = vmul.f32 0.03125, %v839_v59  ;;  %v845_v63 = vmul.f32 %v3083_v58, %v3083_v58  ;;  %v169_v59 = vld [vmem:[#allocation2 + $0x190] sm:$0xff] }
 0x7df   :  { %v3087_v2 = vsub.f32 %v833_v51, %v842_v62  ;;  %v847_v15 = vsel %vm178_vm1, %v845_v63, 0.0  ;;  %v2568_v51 = vpack.c.bf16 %v166_v50, %v165_v48  ;;  %v170_v62 = vld [vmem:[#allocation2 + $0x198] sm:$0xff] }
 0x7e0   :  { %848 = vadd.xlane.f32.xlu1 %v847_v15  ;;  %v2576_v63 = vpack.c.bf16 %v170_v62, %v169_v59  ;;  %v171_v15 = vld [vmem:[#allocation2 + $0x1a0] sm:$0xff] }
 0x7e1   :  { %v846_v16 = vmul.f32 %v3087_v2, %v3087_v2  ;;  %2569 = vmatprep.subr.bf16.mxu0 %v2568_v51 }
 0x7e2   :  { %2571 = vmatpush3.bf16.msra.mxu0 %v2568_v51  ;;  %v870_v51 = vrot.slane %v3074_v42, %v869_v45 }
 0x7e3   :  { %v850_v3 = vsel %vm178_vm1, %v846_v16, 0.0  ;;  %2573 = vmatprep.subr.bf16.mxu0 %v2572_v57  ;;  %v172_v16 = vld [vmem:[#allocation2 + $0x1a8] sm:$0xff] }
 0x7e4   :  { %851 = vadd.xlane.f32.xlu0 %v850_v3  ;;  %v2580_v3 = vpack.c.bf16 %v172_v16, %v171_v15  ;;  %v175_v15 = vld [vmem:[#allocation2 + $0x1c0] sm:$0xff]  ;;  %v176_v16 = vld [vmem:[#allocation2 + $0x1c8] sm:$0xff] }
 0x7e6   :  { %2575 = vmatpush3.bf16.msra.mxu0 %v2572_v57 }
 0x7e7   :  { %2577 = vmatprep.subr.bf16.mxu0 %v2576_v63 }
 0x7ea   :  { %2579 = vmatpush3.bf16.msra.mxu0 %v2576_v63 }
 0x7eb   :  { %2581 = vmatprep.subr.bf16.mxu0 %v2580_v3 }
 0x7ee   :  { %2583 = vmatpush3.bf16.msra.mxu0 %v2580_v3  ;;  %v2588_v3 = vpack.c.bf16 %v176_v16, %v175_v15 }
 0x7ef   :  { %2585 = vmatprep.subr.bf16.mxu0 %v2584_v7 }
 0x7f2   :  { %2587 = vmatpush3.bf16.msra.mxu0 %v2584_v7 }
 0x7f3   :  { %2589 = vmatprep.subr.bf16.mxu0 %v2588_v3 }
 0x7f6   :  { %2591 = vmatpush3.bf16.msra.mxu0 %v2588_v3 }
 0x7f7   :  { %2629 = vmatprep.subr.bf16.mxu0 %v3037_v5 }
 0x86d   :  { %v849_v9 = vpop.xlane.xlu1 %848 }
 0x86e   :  { %v853_v10 = vmul.f32 0.03125, %v849_v9 }
 0x870   :  { %v855_v12 = vadd.f32 1e-05, %v853_v10 }
 0x871   :  { %v852_v13 = vpop.xlane.xlu0 %851 }
 0x872   :  { %2763 = vrsqrt.f32 %v855_v12  ;;  %v854_v27 = vmul.f32 0.03125, %v852_v13  ;;  %v962_v13 = vsub.s32 4, %v3071_v40 }
 0x874   :  { %v856_v26 = vadd.f32 1e-05, %v854_v27  ;;  %v963_v27 = vrot.slane %v3074_v42, %v962_v13 }
 0x876   :  { %2765 = vrsqrt.f32 %v856_v26 }
 0x87c   :  { %v2764_v48 = vpop.eup %2763 }
 0x87d   :  { %v859_v50 = vmul.f32 %v2764_v48, %v3083_v58  ;;  %v875_v58 = vsub.s32 3, %v3071_v40 }
 0x87f   :  { %v865_v52 = vmul.f32 %v864_v47, %v859_v50 }
 0x880   :  { %v2766_v54 = vpop.eup %2765 }
 0x881   :  { %v860_v57 = vmul.f32 %v2766_v54, %v3087_v2  ;;  %v871_v59 = vadd.f32 %v870_v51, %v865_v52  ;;  %v876_v2 = vrot.slane %v3074_v42, %v875_v58 }
 0x883   :  { %v866_v62 = vmul.f32 %v864_v47, %v860_v57  ;;  %2293 = vmatprep.mubr.msk.f32.mxu1 %vm178_vm1, %v871_v59 }
 0x885   :  { %v872_v63 = vadd.f32 %v870_v51, %v866_v62 }
 0x887   :  { %2294 = vmatmul.mubr.msk.f32.vlgmr.msra.gmra.mrb[4].mxu1 %vm178_vm1, %v872_v63 }
 0x95a   :  { %v2295_v4 = vpop.f32.mrb[4].mxu1 }
 0x95b   :  { %v955_v6 = vadd.f32 %v2295_v4, %v876_v2  ;;  %v949_v7 = vpop.f32.mrb[5].mxu1  ;;  %v1080_v4 = vld [vmem:[#allocation2 + $0x1e0] sm:$0xff] }
 0x95c   :  { %v950_v9 = vadd.f32 %v949_v7, %v876_v2  ;;  %v1081_v7 = vld [vmem:[#allocation2 + $0x1e8] sm:$0xff] }
 0x95d   :  { %v959_v12 = vmax.f32 %v955_v6, 0.0 }
 0x95e   :  { %v958_v10 = vmax.f32 %v950_v9, 0.0  ;;  %v1082_v9 = vld [vmem:[#allocation2 + $0x1f0] sm:$0xff] }
 0x960   :  { %2328 = vmatprep.mubr.f32.mxu0 %v958_v10  ;;  %v2596_v10 = vpack.c.bf16 %v1082_v9, %v1081_v7 }
 0x961   :  { %2329 = vmatmul.mubr.f32.vlgmr.msra.gmra.mrb[16].mxu0 %v959_v12 }
 0x962   :  { %2631 = vmatpush3.bf16.msra.mxu0 %v3037_v5 }
 0x963   :  { %2633 = vmatprep.subr.bf16.mxu0 %v3041_v8 }
 0x966   :  { %2635 = vmatpush3.bf16.msra.mxu0 %v3041_v8 }
 0x967   :  { %2637 = vmatprep.subr.bf16.mxu0 %v3043_v11 }
 0x96a   :  { %2639 = vmatpush3.bf16.msra.mxu0 %v3043_v11 }
 0x96b   :  { %2641 = vmatprep.subr.bf16.mxu0 %v3048_v14 }
 0x96e   :  { %2643 = vmatpush3.bf16.msra.mxu0 %v3048_v14 }
 0xa34   :  { %v2330_v26 = vpop.f32.mrb[16].mxu0 }
 0xa35   :  { %v1036_v5 = vadd.f32 %v2330_v26, %v963_v27  ;;  %v1030_v47 = vpop.f32.mrb[17].mxu0 }
 0xa36   :  { %v1031_v48 = vadd.f32 %v1030_v47, %v963_v27 }
 0xa37   :  { %v1040_v50 = vadd.f32 %v1036_v5, %v872_v63 }
 0xa38   :  { %v1039_v8 = vadd.f32 %v1031_v48, %v871_v59  ;;  %v1079_v59 = vld [vmem:[#allocation2 + $0x1d8] sm:$0xff] }
 0xa39   :  { %v1044_v51 = vsel %vm178_vm1, %v1040_v50, 0.0  ;;  %v2592_v6 = vpack.c.bf16 %v1080_v4, %v1079_v59 }
 0xa3a   :  { %1045 = vadd.xlane.f32.xlu0 %v1044_v51  ;;  %v1041_v11 = vsel %vm178_vm1, %v1039_v8, 0.0 }
 0xa3b   :  { %1042 = vadd.xlane.f32.xlu1 %v1041_v11  ;;  %2593 = vmatprep.subr.bf16.mxu1 %v2592_v6 }
 0xa3c   :  { %2595 = vmatpush3.bf16.msra.mxu1 %v2592_v6 }
 0xa3d   :  { %2597 = vmatprep.subr.bf16.mxu1 %v2596_v10 }
 0xa40   :  { %2599 = vmatpush3.bf16.msra.mxu1 %v2596_v10 }
 0xac7   :  { %v1046_v52 = vpop.xlane.xlu0 %1045 }
 0xac8   :  { %v1048_v14 = vmul.f32 0.03125, %v1046_v52  ;;  %v1043_v54 = vpop.xlane.xlu1 %1042 }
 0xac9   :  { %v1047_v57 = vmul.f32 0.03125, %v1043_v54 }
 0xaca   :  { %v1050_v62 = vsub.f32 %v1040_v50, %v1048_v14  ;;  %v1069_v50 = vsub.s32 5, %v3071_v40 }
 0xacb   :  { %v1049_v15 = vsub.f32 %v1039_v8, %v1047_v57  ;;  %v1075_v8 = vsub.s32 6, %v3071_v40 }
 0xacc   :  { %v1052_v16 = vmul.f32 %v1050_v62, %v1050_v62  ;;  %v1070_v51 = vrot.slane %v3074_v42, %v1069_v50 }
 0xacd   :  { %v1051_v3 = vmul.f32 %v1049_v15, %v1049_v15  ;;  %v1076_v57 = vrot.slane %v3074_v42, %v1075_v8 }
 0xace   :  { %v1056_v2 = vsel %vm178_vm1, %v1052_v16, 0.0 }
 0xacf   :  { %1057 = vadd.xlane.f32.xlu0 %v1056_v2  ;;  %v1053_v63 = vsel %vm178_vm1, %v1051_v3, 0.0 }
 0xad0   :  { %1054 = vadd.xlane.f32.xlu1 %v1053_v63 }
 0xb5c   :  { %v1058_v12 = vpop.xlane.xlu0 %1057 }
 0xb5d   :  { %v1060_v27 = vmul.f32 0.03125, %v1058_v12  ;;  %v1055_v26 = vpop.xlane.xlu1 %1054 }
 0xb5e   :  { %v1059_v5 = vmul.f32 0.03125, %v1055_v26 }
 0xb5f   :  { %v1062_v47 = vadd.f32 1e-05, %v1060_v27 }
 0xb60   :  { %v1061_v48 = vadd.f32 1e-05, %v1059_v5 }
 0xb61   :  { %2767 = vrsqrt.f32 %v1062_v47 }
 0xb62   :  { %2769 = vrsqrt.f32 %v1061_v48 }
 0xb6b   :  { %v2768_v11 = vpop.eup %2767 }
 0xb6c   :  { %v2770_v52 = vpop.eup %2769  ;;  %v1066_v14 = vmul.f32 %v2768_v11, %v1050_v62 }
 0xb6d   :  { %v1065_v54 = vmul.f32 %v2770_v52, %v1049_v15 }
 0xb6e   :  { %v1072_v16 = vmul.f32 %v1070_v51, %v1066_v14 }
 0xb6f   :  { %v1071_v3 = vmul.f32 %v1070_v51, %v1065_v54 }
 0xb70   :  { %v3135_v63 = vadd.f32 %v1076_v57, %v1072_v16 }
 0xb71   :  { %v3133_v2 = vadd.f32 %v1076_v57, %v1071_v3 }
 0xb73   :  { %2339 = vmatprep.mubr.msk.f32.mxu1 %vm178_vm1, %v3133_v2 }
 0xb74   :  { %2340 = vmatmul.mubr.msk.f32.vlgmr.msra.gmra.mrb[6].mxu1 %vm178_vm1, %v3135_v63 }
 0xb75   :  { %2346 = vmatprep.mubr.msk.f32.mxu1 %vm67_vm0, %v2893_v17 }
 0xc47   :  { %v2341_v62 = vpop.f32.mrb[6].mxu1 }
 0xc48   :  { %v1180_v15 = vpop.f32.mrb[7].mxu1 }
 0xc49   :  { %v2600_v59 = vpack.c.bf16 %v2341_v62, %v1180_v15 }
 0xc4b   :  { %2601 = vmatprep.subr.bf16.mxu1 %v2600_v59 }
 0xc4c   :  { %2603 = vmatpush3.bf16.msra.mxu1 %v2600_v59 }
 0xc4f   :  { %2347 = vmatmul.mubr.msk.f32.vlgmr.msra.gmra.mrb[8].mxu1 %vm67_vm0, %v2927_v29 }
 0xc50   :  { %2349 = vmatprep.mubr.msk.f32.mxu1 %vm67_vm0, %v2929_v30 }
 0xc53   :  { %2350 = vmatmul.mubr.msk.f32.gmra.mrb[10].mxu1 %vm67_vm0, %v2935_v31 }
 0xc54   :  { %2352 = vmatprep.mubr.msk.f32.mxu1 %vm67_vm0, %v2937_v32 }
 0xc57   :  { %2353 = vmatmul.mubr.msk.f32.gmra.mrb[12].mxu1 %vm67_vm0, %v2943_v33 }
 0xc58   :  { %2355 = vmatprep.mubr.msk.f32.mxu1 %vm67_vm0, %v2945_v34 }
 0xc5b   :  { %2356 = vmatmul.mubr.msk.f32.gmra.mrb[14].mxu1 %vm67_vm0, %v2951_v35 }
 0xd22   :  { %v2348_v17 = vpop.f32.mrb[8].mxu1 }
 0xd23   :  { %v1295_v29 = vmul.f32 %v2348_v17, %v2903_v20  ;;  %v1303_v30 = vmul.f32 %v2348_v17, %v2959_v38  ;;  %v1255_v42 = vpop.f32.mrb[9].mxu1 }
 0xd24   :  { %v1302_v31 = vmul.f32 %v1255_v42, %v2955_v36  ;;  %v1294_v4 = vmul.f32 %v1255_v42, %v2897_v18 }
 0xd26   :  { %v2735_v32 = vpack.i.bf16 %v1303_v30, %v1302_v31  ;;  %v2644_v6 = vpack.c.bf16 %v1295_v29, %v1294_v4  ;;  %v2351_v7 = vpop.f32.mrb[10].mxu1 }
 0xd27   :  { %v1297_v33 = vmul.f32 %v2351_v7, %v2905_v21  ;;  %v1305_v34 = vmul.f32 %v2351_v7, %v2961_v39  ;;  %v1265_v9 = vpop.f32.mrb[11].mxu1 }
 0xd28   :  { %v1304_v35 = vmul.f32 %v1265_v9, %v2957_v37  ;;  %v1296_v10 = vmul.f32 %v1265_v9, %v2899_v19  ;;  %2736 = vrot.lane.b32.xlu1 %v2735_v32, %s2839_s1 }
 0xd2a   :  { %v2740_v20 = vpack.i.bf16 %v1305_v34, %v1304_v35  ;;  %v2648_v38 = vpack.c.bf16 %v1297_v33, %v1296_v10  ;;  %v2354_v12 = vpop.f32.mrb[12].mxu1 }
 0xd2b   :  { %v1299_v36 = vmul.f32 %v2354_v12, %v2909_v22  ;;  %v1307_v18 = vmul.f32 %v2354_v12, %v2967_v49  ;;  %v1275_v27 = vpop.f32.mrb[13].mxu1 }
 0xd2c   :  { %v1306_v26 = vmul.f32 %v1275_v27, %v2971_v53  ;;  %v1298_v21 = vmul.f32 %v1275_v27, %v2911_v23  ;;  %2741 = vrot.lane.b32.xlu0 %v2740_v20, %s2839_s1  ;;  %v1084_v27 = vld [vmem:[#allocation2 + $0x200] sm:$0xff] }
 0xd2e   :  { %v2745_v39 = vpack.i.bf16 %v1307_v18, %v1306_v26  ;;  %v2652_v37 = vpack.c.bf16 %v1299_v36, %v1298_v21  ;;  %v2357_v5 = vpop.f32.mrb[14].mxu1  ;;  %v1083_v18 = vld [vmem:[#allocation2 + $0x1f8] sm:$0xff]  ;;  %v1085_v26 = vld [vmem:[#allocation2 + $0x208] sm:$0xff] }
 0xd2f   :  { %v1301_v19 = vmul.f32 %v2357_v5, %v2915_v24  ;;  %v1309_v47 = vmul.f32 %v2357_v5, %v2981_v0  ;;  %v1285_v48 = vpop.f32.mrb[15].mxu1  ;;  %v2660_v21 = vpack.c.bf16 %v1084_v27, %v1083_v18  ;;  %v1101_v18 = vld [vmem:[#allocation2 + $0x288] sm:$0xff]  ;;  %v1102_v27 = vld [vmem:[#allocation2 + $0x290] sm:$0xff] }
 0xd30   :  { %v1308_v51 = vmul.f32 %v1285_v48, %v2983_v1  ;;  %v1300_v22 = vmul.f32 %v1285_v48, %v2917_v25  ;;  %1312 = vrot.lane.b32.xlu0 %v1180_v15, %s2840_s30  ;;  %2746 = vrot.lane.b32.xlu1 %v2745_v39, %s2839_s1  ;;  %v1086_v39 = vld [vmem:[#allocation2 + $0x210] sm:$0xff] }
 0xd31   :  { %2661 = vmatprep.subr.bf16.mxu0 %v2660_v21 }
 0xd32   :  { %v2750_v49 = vpack.i.bf16 %v1309_v47, %v1308_v51  ;;  %v2656_v23 = vpack.c.bf16 %v1301_v19, %v1300_v22 }
 0xd34   :  { %2751 = vrot.lane.b32.xlu1 %v2750_v49, %s2839_s1 }
 0xd38   :  { %1314 = vrot.lane.b32.xlu1 %v2341_v62, %s2840_s30 }
 0xd9a   :  { %v2737_v53 = vpop.permute.xlu1 %2736 }
 0xd9b   :  { %v2739_v11 = vunpack.i.h.bf16 %v2737_v53  ;;  %v2738_v24 = vunpack.i.l.bf16 %v2737_v53 }
 0xd9d   :  { %v2604_v52 = vpack.c.bf16 %v2739_v11, %v2738_v24 }
 0xd9e   :  { %v2742_v0 = vpop.permute.xlu0 %2741 }
 0xd9f   :  { %v2744_v14 = vunpack.i.h.bf16 %v2742_v0  ;;  %v2743_v54 = vunpack.i.l.bf16 %v2742_v0  ;;  %2606 = vmatprep.subr.msk.bf16.mxu1 %vm2997_vm2, %v2604_v52 }
 0xda0   :  { %2609 = vmatpush3.bf16.xpose.msk.msra.mxu1 %vm2997_vm2, %v2604_v52 }
 0xda1   :  { %v2610_v25 = vpack.c.bf16 %v2744_v14, %v2743_v54 }
 0xda2   :  { %v1313_v1 = vpop.permute.xlu0 %1312  ;;  %v2747_v57 = vpop.permute.xlu1 %2746 }
 0xda3   :  { %v2749_v16 = vunpack.i.h.bf16 %v2747_v57  ;;  %v2748_v3 = vunpack.i.l.bf16 %v2747_v57  ;;  %2612 = vmatprep.subr.msk.bf16.mxu1 %vm2997_vm2, %v2610_v25  ;;  %2374 = vmatprep.mubr.msk.f32.mxu1 %vm178_vm1, %v1313_v1 }
 0xda5   :  { %v2616_v62 = vpack.c.bf16 %v2749_v16, %v2748_v3 }
 0xda6   :  { %v2752_v15 = vpop.permute.xlu1 %2751 }
 0xda7   :  { %v2754_v59 = vunpack.i.h.bf16 %v2752_v15  ;;  %v2753_v17 = vunpack.i.l.bf16 %v2752_v15 }
 0xda8   :  { %2615 = vmatpush3.bf16.xpose.msk.msra.mxu1 %vm2997_vm2, %v2610_v25 }
 0xda9   :  { %2618 = vmatprep.subr.msk.bf16.mxu1 %vm2997_vm2, %v2616_v62  ;;  %v2622_v29 = vpack.c.bf16 %v2754_v59, %v2753_v17  ;;  %v1087_v17 = vld [vmem:[#allocation2 + $0x218] sm:$0xff] }
 0xdaa   :  { %v1315_v30 = vpop.permute.xlu1 %1314 }
 0xdb0   :  { %2621 = vmatpush3.bf16.xpose.msk.msra.mxu1 %vm2997_vm2, %v2616_v62 }
 0xdb1   :  { %2624 = vmatprep.subr.msk.bf16.mxu1 %vm2997_vm2, %v2622_v29 }
 0xdb8   :  { %2627 = vmatpush3.bf16.xpose.msk.msra.mxu1 %vm2997_vm2, %v2622_v29  ;;  %v1088_v29 = vld [vmem:[#allocation2 + $0x220] sm:$0xff] }
 0xdb9   :  { %2645 = vmatprep.subr.bf16.mxu1 %v2644_v6 }
 0xdbf   :  { %2375 = vmatmul.mubr.msk.f32.vlgmr.msra.gmra.mrb[16].mxu1 %vm178_vm1, %v1315_v30  ;;  %v2668_v30 = vpack.c.bf16 %v1088_v29, %v1087_v17 }
 0xdc0   :  { %2647 = vmatpush3.bf16.msra.mxu1 %v2644_v6 }
 0xdc1   :  { %2649 = vmatprep.subr.bf16.mxu1 %v2648_v38 }
 0xdc4   :  { %2651 = vmatpush3.bf16.msra.mxu1 %v2648_v38 }
 0xdc5   :  { %2653 = vmatprep.subr.bf16.mxu1 %v2652_v37 }
 0xdc8   :  { %2655 = vmatpush3.bf16.msra.mxu1 %v2652_v37  ;;  %v2664_v37 = vpack.c.bf16 %v1086_v39, %v1085_v26  ;;  %v2696_v26 = vpack.c.bf16 %v1102_v27, %v1101_v18  ;;  %v1104_v39 = vld [vmem:[#allocation2 + $0x2a0] sm:$0xff] }
 0xdc9   :  { %2657 = vmatprep.subr.bf16.mxu1 %v2656_v23 }
 0xdcc   :  { %2659 = vmatpush3.bf16.msra.mxu1 %v2656_v23 }
 0xe92   :  { %v2376_v42 = vpop.f32.mrb[16].mxu1 }
 0xe93   :  { %v1436_v31 = vsel %vm62_vm3, -1e+20, %v2376_v42  ;;  %v1426_v4 = vpop.f32.mrb[17].mxu1  ;;  %v1089_v42 = vld [vmem:[#allocation2 + $0x228] sm:$0xff] }
 0xe94   :  { %v1438_v32 = vmul.f32 0.17677669, %v1436_v31  ;;  %v1435_v28 = vsel %vm61_vm4, -1e+20, %v1426_v4  ;;  %v1090_v31 = vld [vmem:[#allocation2 + $0x230] sm:$0xff] }
 0xe95   :  { %v1437_v7 = vmul.f32 0.17677669, %v1435_v28  ;;  %v2672_v4 = vpack.c.bf16 %v1090_v31, %v1089_v42  ;;  %v1092_v28 = vld [vmem:[#allocation2 + $0x240] sm:$0xff] }
 0xe96   :  { %v1442_v33 = vsel %vm566_vm5, %v1438_v32, -inf }
 0xe97   :  { %1443 = vmax.xlane.f32.xlu1 %v1442_v33  ;;  %v1439_v6 = vsel %vm566_vm5, %v1437_v7, -inf }
 0xe98   :  { %1440 = vmax.xlane.f32.xlu0 %v1439_v6  ;;  %v1094_v6 = vld [vmem:[#allocation2 + $0x250] sm:$0xff] }
 0xf24   :  { %v1444_v34 = vpop.xlane.xlu1 %1443 }
 0xf25   :  { %v1446_v9 = vsub.f32 %v1438_v32, %v1444_v34  ;;  %v1441_v35 = vpop.xlane.xlu0 %1440  ;;  %v1091_v32 = vld [vmem:[#allocation2 + $0x238] sm:$0xff] }
 0xf26   :  { %v1445_v10 = vsub.f32 %v1437_v7, %v1441_v35  ;;  %v1093_v7 = vld [vmem:[#allocation2 + $0x248] sm:$0xff]  ;;  %v2676_v33 = vpack.c.bf16 %v1092_v28, %v1091_v32  ;;  %v1096_v35 = vld [vmem:[#allocation2 + $0x260] sm:$0xff] }
 0xf27   :  { %v1449_v20 = vmul.f32 1.442695, %v1446_v9  ;;  %v2680_v34 = vpack.c.bf16 %v1094_v6, %v1093_v7  ;;  %v1095_v9 = vld [vmem:[#allocation2 + $0x258] sm:$0xff] }
 0xf28   :  { %v1447_v38 = vmul.f32 1.442695, %v1445_v10  ;;  %2677 = vmatprep.subr.bf16.mxu1 %v2676_v33  ;;  %v2684_v10 = vpack.c.bf16 %v1096_v35, %v1095_v9 }
 0xf29   :  { %2771 = vpow2.f32 %v1449_v20  ;;  %v1097_v20 = vld [vmem:[#allocation2 + $0x268] sm:$0xff] }
 0xf2a   :  { %2773 = vpow2.f32 %v1447_v38  ;;  %v1098_v38 = vld [vmem:[#allocation2 + $0x270] sm:$0xff] }
 0xf33   :  { %v2772_v55 = vpop.eup %2771 }
 0xf34   :  { %v2774_v12 = vpop.eup %2773  ;;  %v1452_v36 = vmul.f32 %v2772_v55, %v3055_v46  ;;  %v3215_v46 = vld [vmem:[#allocation2 + $0x2b8] sm:$0xff]  ;;  %v2688_v55 = vpack.c.bf16 %v1098_v38, %v1097_v20 }
 0xf35   :  { %v1451_v56 = vmul.f32 %v2774_v12, %v3053_v44  ;;  %v1622_v44 = vrot.slane %v3215_v46, %v749_v41  ;;  %v1099_v12 = vld [vmem:[#allocation2 + $0x278] sm:$0xff]  ;;  %v1947_v27 = vrot.slane %v3215_v46, %v1075_v8 }
 0xf37   :  { %2393 = vmatprep.mubr.msk.f32.mxu0 %vm566_vm5, %v1451_v56 }
 0xf38   :  { %2394 = vmatmul.mubr.msk.f32.vlgmr.msra.gmra.mrb[18].mxu0 %vm566_vm5, %v1452_v36 }
 0xf39   :  { %2663 = vmatpush3.bf16.msra.mxu0 %v2660_v21  ;;  %v1103_v21 = vld [vmem:[#allocation2 + $0x298] sm:$0xff] }
 0xf3a   :  { %2665 = vmatprep.subr.bf16.mxu0 %v2664_v37 }
 0xf3d   :  { %2667 = vmatpush3.bf16.msra.mxu0 %v2664_v37  ;;  %v2700_v37 = vpack.c.bf16 %v1104_v39, %v1103_v21 }
 0xf3e   :  { %2669 = vmatprep.subr.bf16.mxu0 %v2668_v30 }
0x100b   :  { %v2395_v5 = vpop.f32.mrb[18].mxu0 }
0x100c   :  { %v1531_v19 = vadd.f32 %v2395_v5, %v64_v60  ;;  %v1525_v47 = vpop.f32.mrb[19].mxu0 }
0x100d   :  { %v1526_v48 = vadd.f32 %v1525_v47, %v63_v61 }
0x100e   :  { %2775 = vrcp.f32 %v1531_v19 }
0x100f   :  { %2777 = vrcp.f32 %v1526_v48 }
0x1018   :  { %v2776_v51 = vpop.eup %2775 }
0x1019   :  { %v2778_v22 = vpop.eup %2777  ;;  %v1537_v23 = vmul.f32 %v2776_v51, %v1452_v36 }
0x101a   :  { %v1536_v49 = vmul.f32 %v2778_v22, %v1451_v56  ;;  %v1100_v56 = vld [vmem:[#allocation2 + $0x280] sm:$0xff] }
0x101b   :  { %v2692_v36 = vpack.c.bf16 %v1100_v56, %v1099_v12  ;;  %v1941_v12 = vrot.slane %v3215_v46, %v1069_v50 }
0x101c   :  { %2412 = vmatprep.mubr.msk.f32.mxu1 %vm566_vm5, %v1536_v49  ;;  %v1735_v49 = vrot.slane %v3215_v46, %v863_v43  ;;  %v1106_v43 = vld [vmem:[#allocation2 + $0x2b0] sm:$0xff] }
0x101d   :  { %2413 = vmatmul.mubr.msk.f32.vlgmr.msra.gmra.mrb[18].mxu1 %vm566_vm5, %v1537_v23 }
0x101e   :  { %2679 = vmatpush3.bf16.msra.mxu1 %v2676_v33 }
0x101f   :  { %2681 = vmatprep.subr.bf16.mxu1 %v2680_v34 }
0x1022   :  { %2683 = vmatpush3.bf16.msra.mxu1 %v2680_v34 }
0x1023   :  { %2685 = vmatprep.subr.bf16.mxu1 %v2684_v10 }
0x1026   :  { %2687 = vmatpush3.bf16.msra.mxu1 %v2684_v10 }
0x1027   :  { %2689 = vmatprep.subr.bf16.mxu1 %v2688_v55 }
0x102a   :  { %2691 = vmatpush3.bf16.msra.mxu1 %v2688_v55 }
0x102b   :  { %2693 = vmatprep.subr.bf16.mxu1 %v2692_v36 }
0x102e   :  { %2695 = vmatpush3.bf16.msra.mxu1 %v2692_v36 }
0x102f   :  { %2697 = vmatprep.subr.bf16.mxu1 %v2696_v26 }
0x1032   :  { %2699 = vmatpush3.bf16.msra.mxu1 %v2696_v26 }
0x1033   :  { %2701 = vmatprep.subr.bf16.mxu1 %v2700_v37 }
0x1036   :  { %2703 = vmatpush3.bf16.msra.mxu1 %v2700_v37 }
0x10f0   :  { %v2414_v53 = vpop.f32.mrb[18].mxu1 }
0x10f1   :  { %v1610_v11 = vpop.f32.mrb[19].mxu1 }
0x10f2   :  { %2423 = vmatprep.mubr.msk.f32.mxu0 %vm178_vm1, %v1610_v11  ;;  %v1741_v11 = vrot.slane %v3215_v46, %v869_v45  ;;  %v1747_v45 = vrot.slane %v3215_v46, %v875_v58 }
0x10f3   :  { %2424 = vmatmul.mubr.msk.f32.vlgmr.msra.gmra.mrb[20].mxu0 %vm178_vm1, %v2414_v53 }
0x10f4   :  { %2671 = vmatpush3.bf16.msra.mxu0 %v2668_v30 }
0x10f5   :  { %2673 = vmatprep.subr.bf16.mxu0 %v2672_v4 }
0x10f8   :  { %2675 = vmatpush3.bf16.msra.mxu0 %v2672_v4 }
0x11c6   :  { %v2425_v60 = vpop.f32.mrb[20].mxu0 }
0x11c7   :  { %v1695_v61 = vpop.f32.mrb[21].mxu0  ;;  %v1701_v24 = vadd.f32 %v2425_v60, %v1622_v44 }
0x11c8   :  { %v1696_v52 = vadd.f32 %v1695_v61, %v1622_v44 }
0x11c9   :  { %v1705_v54 = vadd.f32 %v1701_v24, %v3135_v63 }
0x11ca   :  { %v1704_v0 = vadd.f32 %v1696_v52, %v3133_v2 }
0x11cb   :  { %v1709_v25 = vsel %vm178_vm1, %v1705_v54, 0.0 }
0x11cc   :  { %v1706_v14 = vsel %vm178_vm1, %v1704_v0, 0.0 }
0x11cd   :  { %1707 = vadd.xlane.f32.xlu0 %v1706_v14  ;;  %v1105_v14 = vld [vmem:[#allocation2 + $0x2a8] sm:$0xff] }
0x11d1   :  { %1710 = vadd.xlane.f32.xlu0 %v1709_v25 }
0x125a   :  { %v1708_v1 = vpop.xlane.xlu0 %1707 }
0x125b   :  { %v1712_v57 = vmul.f32 0.03125, %v1708_v1 }
0x125d   :  { %v3224_v16 = vsub.f32 %v1704_v0, %v1712_v57 }
0x125e   :  { %v1711_v3 = vpop.xlane.xlu0 %1710 }
0x125f   :  { %v1713_v41 = vmul.f32 0.03125, %v1711_v3  ;;  %v1716_v62 = vmul.f32 %v3224_v16, %v3224_v16 }
0x1261   :  { %v3228_v15 = vsub.f32 %v1705_v54, %v1713_v41  ;;  %v1718_v2 = vsel %vm178_vm1, %v1716_v62, 0.0  ;;  %v2704_v54 = vpack.c.bf16 %v1106_v43, %v1105_v14  ;;  %v1834_v62 = vrot.slane %v3215_v46, %v962_v13 }
0x1262   :  { %1719 = vadd.xlane.f32.xlu1 %v1718_v2 }
0x1263   :  { %v1717_v63 = vmul.f32 %v3228_v15, %v3228_v15  ;;  %2705 = vmatprep.subr.bf16.mxu1 %v2704_v54 }
0x1264   :  { %2707 = vmatpush3.bf16.msra.mxu1 %v2704_v54 }
0x1265   :  { %v1721_v59 = vsel %vm178_vm1, %v1717_v63, 0.0 }
0x1266   :  { %1722 = vadd.xlane.f32.xlu0 %v1721_v59 }
0x12ef   :  { %v1720_v5 = vpop.xlane.xlu1 %1719 }
0x12f0   :  { %v1724_v19 = vmul.f32 0.03125, %v1720_v5 }
0x12f2   :  { %v1726_v47 = vadd.f32 1e-05, %v1724_v19 }
0x12f3   :  { %v1723_v48 = vpop.xlane.xlu0 %1722 }
0x12f4   :  { %2779 = vrsqrt.f32 %v1726_v47  ;;  %v1725_v51 = vmul.f32 0.03125, %v1723_v48 }
0x12f6   :  { %v1727_v22 = vadd.f32 1e-05, %v1725_v51 }
0x12f8   :  { %2781 = vrsqrt.f32 %v1727_v22 }
0x12fe   :  { %v2780_v23 = vpop.eup %2779 }
0x12ff   :  { %v1730_v53 = vmul.f32 %v2780_v23, %v3224_v16 }
0x1301   :  { %v1736_v44 = vmul.f32 %v1735_v49, %v1730_v53 }
0x1302   :  { %v2782_v60 = vpop.eup %2781 }
0x1303   :  { %v1731_v61 = vmul.f32 %v2782_v60, %v3228_v15  ;;  %v1742_v24 = vadd.f32 %v1741_v11, %v1736_v44 }
0x1305   :  { %v1737_v52 = vmul.f32 %v1735_v49, %v1731_v61  ;;  %2434 = vmatprep.mubr.msk.f32.mxu0 %vm178_vm1, %v1742_v24 }
0x1307   :  { %v1743_v0 = vadd.f32 %v1741_v11, %v1737_v52 }
0x1309   :  { %2435 = vmatmul.mubr.msk.f32.vlgmr.msra.gmra.mrb[22].mxu0 %vm178_vm1, %v1743_v0 }
0x13dc   :  { %v2436_v25 = vpop.f32.mrb[22].mxu0 }
0x13dd   :  { %v1826_v1 = vadd.f32 %v2436_v25, %v1747_v45  ;;  %v1820_v57 = vpop.f32.mrb[23].mxu0 }
0x13de   :  { %v1821_v16 = vadd.f32 %v1820_v57, %v1747_v45 }
0x13df   :  { %v1830_v41 = vmax.f32 %v1826_v1, 0.0 }
0x13e0   :  { %v1829_v3 = vmax.f32 %v1821_v16, 0.0 }
0x13e2   :  { %2469 = vmatprep.mubr.f32.mxu1 %v1829_v3 }
0x13e3   :  { %2470 = vmatmul.mubr.f32.vlgmr.msra.gmra.mrb[20].mxu1 %v1830_v41 }
0x14b6   :  { %v2471_v15 = vpop.f32.mrb[20].mxu1 }
0x14b7   :  { %v1907_v2 = vadd.f32 %v2471_v15, %v1834_v62  ;;  %v1901_v63 = vpop.f32.mrb[21].mxu1 }
0x14b8   :  { %v1902_v59 = vadd.f32 %v1901_v63, %v1834_v62 }
0x14b9   :  { %v1911_v17 = vadd.f32 %v1907_v2, %v1743_v0 }
0x14ba   :  { %v1910_v29 = vadd.f32 %v1902_v59, %v1742_v24 }
0x14bb   :  { %v1915_v58 = vsel %vm178_vm1, %v1911_v17, 0.0 }
0x14bc   :  { %1916 = vadd.xlane.f32.xlu0 %v1915_v58  ;;  %v1912_v30 = vsel %vm178_vm1, %v1910_v29, 0.0 }
0x14bd   :  { %1913 = vadd.xlane.f32.xlu1 %v1912_v30 }
0x1549   :  { %v1917_v42 = vpop.xlane.xlu0 %1916 }
0x154a   :  { %v1919_v31 = vmul.f32 0.03125, %v1917_v42  ;;  %v1914_v4 = vpop.xlane.xlu1 %1913 }
0x154b   :  { %v1918_v32 = vmul.f32 0.03125, %v1914_v4 }
0x154c   :  { %v1921_v28 = vsub.f32 %v1911_v17, %v1919_v31 }
0x154d   :  { %v1920_v7 = vsub.f32 %v1910_v29, %v1918_v32 }
0x154e   :  { %v1923_v33 = vmul.f32 %v1921_v28, %v1921_v28 }
0x154f   :  { %v1922_v13 = vmul.f32 %v1920_v7, %v1920_v7 }
0x1550   :  { %v1927_v6 = vsel %vm178_vm1, %v1923_v33, 0.0 }
0x1551   :  { %1928 = vadd.xlane.f32.xlu0 %v1927_v6  ;;  %v1924_v34 = vsel %vm178_vm1, %v1922_v13, 0.0 }
0x1552   :  { %1925 = vadd.xlane.f32.xlu1 %v1924_v34 }
0x15de   :  { %v1929_v9 = vpop.xlane.xlu0 %1928 }
0x15df   :  { %v1931_v35 = vmul.f32 0.03125, %v1929_v9  ;;  %v1926_v10 = vpop.xlane.xlu1 %1925 }
0x15e0   :  { %v1930_v20 = vmul.f32 0.03125, %v1926_v10 }
0x15e1   :  { %v1933_v38 = vadd.f32 1e-05, %v1931_v35 }
0x15e2   :  { %v1932_v55 = vadd.f32 1e-05, %v1930_v20 }
0x15e3   :  { %2783 = vrsqrt.f32 %v1933_v38 }
0x15e4   :  { %2785 = vrsqrt.f32 %v1932_v55 }
0x15ed   :  { %v2784_v56 = vpop.eup %2783 }
0x15ee   :  { %v2786_v36 = vpop.eup %2785  ;;  %v1937_v18 = vmul.f32 %v2784_v56, %v1921_v28 }
0x15ef   :  { %v1936_v26 = vmul.f32 %v2786_v36, %v1920_v7 }
0x15f0   :  { %v1943_v21 = vmul.f32 %v1941_v12, %v1937_v18 }
0x15f1   :  { %v1942_v39 = vmul.f32 %v1941_v12, %v1936_v26 }
0x15f2   :  { %v1949_v37 = vadd.f32 %v1947_v27, %v1943_v21 }
0x15f3   :  { %v1948_v5 = vadd.f32 %v1947_v27, %v1942_v39 }
0x15f4   :  { %1951 = vst.msk [vmem:[#allocation5 + $0x8] sm:$0xff] %vm178_vm1, %v1949_v37 }
0x15f5   :  { %1950 = vst.msk [vmem:[#allocation5] sm:$0xff] %vm178_vm1, %v1948_v5 }
0x15f6   :  { %2820 = shalt.err (!%p2817_p12)
}
0x15f7   :  { %s2821_s12 = scalar_lea.hbm %s3280_s3, 256 }
0x15f8   :  { %p2822_p13 = scmp.ne.s32.totalorder %s3280_s3, %s2821_s12  ;;  %p2825_p0 = scmp.lt.u32.totalorder %s2821_s12, %s3280_s3 }
0x15fa   :  { %p2827_p1 = pnand %p2825_p0, %p2822_p13 }
0x15fc   :  { %2830 = shalt.err (!%p2827_p1)
}
0x15fd   :  { %1963 = dma.vmem_to_hbm [thread:$0]  %s1958_s8, 256, %s3280_s3, [#allocation4], %s2836_s22, %s2836_s22, %s2837_s23  }
0x15fe   :  { %2833 = dma.done.wait [#allocation4], 256  }
0x15ff   :  { %2834 = vsyncadd [#allocation4], 4294967040 }
0x1600   :  { %1967 = vsyncpa [#allocation3], 1 }
0x1601   :  { %1968 = vsyncpa [#allocation4], 1 }

</bundles_post_ra>
